<compile_context>
chip_gen: v7x
topology: tpu7x:2x2x1
jax: 0.10.0
libtpu: 0.0.40
codegen_flags: <defaults>
</compile_context>

<pallas_src>
import math

import jax
import jax.numpy as jnp
from jax.experimental import pallas as pl
from jax.experimental.pallas import tpu as pltpu


def _cdiv(a, b):
    return -(-a // b)


def _choose_tb(B, D, vmem_budget_bytes=20 * 1024 * 1024, tb_cap=1024):
    """Pick the batch-tile size (rows per grid step).

    The kernel is HBM-bound, so we want the largest tile that fits the VMEM
    budget (per-step fixed overhead ~0.35us; 512-1024-row tiles sit near the
    HBM roofline).  The 20 MiB budget leaves headroom under v7x's 32 MiB
    scoped VMEM and is trivially safe on v5e/v6e (128 MiB).  We also keep at
    least two grid steps when the batch allows it so v7x's two TensorCores
    both get work under dimension_semantics=("parallel",).
    """
    # VMEM-resident constants (single-buffered bf16 weights + f32 biases/w3).
    const_bytes = D * 128 * 2 + 128 * 64 * 2 + (128 + 64 + 64 + 1) * 4
    # Per batch-row cost: double-buffered f32 x tile (8*D) + in-kernel bf16
    # copy (2*D) + f32/bf16 h1 (6*128) + f32 h2 (4*64) + double-buffered out.
    per_row = 8 * D + 2 * D + 6 * 128 + 4 * 64 + 8
    cap = (vmem_budget_bytes - const_bytes) // per_row
    cap = max(128, (cap // 128) * 128)
    cap = min(cap, tb_cap)
    # >= 2 grid steps when B is large enough (v7x megacore load balance).
    two_way = max(128, 128 * _cdiv(_cdiv(B, 2), 128))
    return int(min(cap, two_way))


def mlp_kernel(x_ref, w1_ref, b1_ref, w2_ref, b2_ref, w3_ref, b3_ref, o_ref):
    # x arrives as f32 straight from HBM (no wrapper-side cast); the bf16
    # cast for the MXU is a cheap VPU op hidden under DMA slack.
    x_bf = x_ref[...].astype(jnp.bfloat16)
    # Layer 1: (TB, D) @ (D, 128) on the MXU, bf16 inputs / f32 accumulate.
    h1 = jnp.dot(x_bf, w1_ref[...], preferred_element_type=jnp.float32)
    h1 = jnp.maximum(h1 + b1_ref[...], 0.0)                      # f32 VPU
    # Layer 2: (TB, 128) @ (128, 64), bf16 inputs / f32 accumulate.
    h2 = jnp.dot(h1.astype(jnp.bfloat16), w2_ref[...],
                 preferred_element_type=jnp.float32)
    h2 = jnp.maximum(h2 + b2_ref[...], 0.0)                      # f32 VPU
    # Layer 3: N=1 "matmul" on the VPU + cross-lane reduce (XLU has slack in
    # this DMA-bound kernel); result becomes lane-dense (1, TB) so the store
    # is unmasked.
    logits = jnp.sum(h2 * w3_ref[...], axis=-1).reshape(1, -1)   # (1, TB)
    logits = logits + b3_ref[...]
    # Exact sigmoid: divide goes to the otherwise-idle EUP slot.
    o_ref[...] = pl.reciprocal(1.0 + jnp.exp(-logits), approx=False)


def prepare_params(params):
    """Cast the large streamed weights to bf16 once (hoisted out of the
    per-call path); biases and the tiny layer-3 weight stay f32."""
    w1, b1, w2, b2, w3, b3 = params
    return (w1.astype(jnp.bfloat16), b1, w2.astype(jnp.bfloat16), b2, w3, b3)


def simple_classifier_forward(x, params, tb=None):
    """Forward pass. x: (B, D) float32 -> (B, 1) float32 probabilities."""
    w1, b1, w2, b2, w3, b3 = params
    B, D = x.shape

    # Casts below are no-ops when the caller used prepare_params() (preferred);
    # the guard keeps the API forgiving for f32 params.
    if w1.dtype != jnp.bfloat16:
        w1 = w1.astype(jnp.bfloat16)
    if w2.dtype != jnp.bfloat16:
        w2 = w2.astype(jnp.bfloat16)

    if tb is None:
        tb = _choose_tb(B, D)
    num_tiles = _cdiv(B, tb)   # ragged last tile handled by Pallas masking

    flops = 2 * B * (D * 128 + 128 * 64 + 64)
    bytes_accessed = (
        x.size * 4 + w1.size * 2 + w2.size * 2
        + (b1.size + b2.size + w3.size + b3.size) * 4 + B * 4
    )

    def call(single_buffer_consts):
        if single_buffer_consts:
            # Constant blocks never change across grid steps -> one VMEM
            # buffer instead of the default double buffer (VMEM headroom
            # goes straight into a larger tb on v7x).
            const = lambda s: pl.BlockSpec(s, lambda i: (0, 0),
                                           pipeline_mode=pl.Buffered(1))
        else:
            const = lambda s: pl.BlockSpec(s, lambda i: (0, 0))
        return pl.pallas_call(
            mlp_kernel,
            out_shape=jax.ShapeDtypeStruct((1, B), jnp.float32),
            grid=(num_tiles,),
            in_specs=[
                pl.BlockSpec((tb, D), lambda i: (i, 0)),   # x: f32, auto-pipelined
                const(w1.shape), const(b1.shape),
                const(w2.shape), const(b2.shape),
                const(w3.shape), const(b3.shape),
            ],
            out_specs=pl.BlockSpec((1, tb), lambda i: (0, i)),  # lane-dense out
            compiler_params=pltpu.CompilerParams(
                dimension_semantics=("parallel",),
                vmem_limit_bytes=32 * 1024 * 1024),
            cost_estimate=pl.CostEstimate(
                flops=flops, transcendentals=B, bytes_accessed=bytes_accessed),
        )(x, w1, b1, w2, b2, w3, b3)

    try:
        out_row = call(True)
    except Exception:
        # Fallback for jax versions that reject pipeline_mode=pl.Buffered(1)
        # on the top-level grid pipeline; costs one extra VMEM buffer per
        # constant operand, correctness identical.
        out_row = call(False)

    return out_row.reshape(B, 1)


def init_params(key, input_dim):
    """PyTorch nn.Linear-style init: U(+/- 1/sqrt(fan_in)) for W and b.

    W1/W2 are stored as (in, out) so the kernel computes x @ W directly;
    W3 is stored as a (1, 64) row vector for the VPU layer-3 path.
    """
    params = []
    for fan_in, fan_out in [(input_dim, 128), (128, 64), (64, 1)]:
        key, kw, kb = jax.random.split(key, 3)
        bound = 1.0 / math.sqrt(fan_in)
        w = jax.random.uniform(kw, (fan_in, fan_out), jnp.float32,
                               minval=-bound, maxval=bound)
        b = jax.random.uniform(kb, (1, fan_out), jnp.float32,
                               minval=-bound, maxval=bound)
        params.extend([w, b])
    w1, b1, w2, b2, w3, b3 = params
    return (w1, b1, w2, b2, w3.T, b3)   # w3 -> (1, 64)


def reference_forward(x, params, stream_bf16):
    """Pure-JAX reference. stream_bf16=True mimics the kernel's bf16 matmuls."""
    w1, b1, w2, b2, w3, b3 = params
    if stream_bf16:
        xb, w1b, w2b = (a.astype(jnp.bfloat16) for a in (x, w1, w2))
        h1 = jnp.maximum(
            jnp.dot(xb, w1b, preferred_element_type=jnp.float32) + b1, 0.0)
        h2 = jnp.maximum(
            jnp.dot(h1.astype(jnp.bfloat16), w2b,
                    preferred_element_type=jnp.float32) + b2, 0.0)
    else:
        h1 = jnp.maximum(x @ w1 + b1, 0.0)
        h2 = jnp.maximum(h1 @ w2 + b2, 0.0)
    return jax.nn.sigmoid(jnp.sum(h2 * w3, axis=-1, keepdims=True) + b3)


if __name__ == "__main__":
    key = jax.random.PRNGKey(0)
    key, kx = jax.random.split(key)

    B, input_dim = 8, 32
    x = jax.random.normal(kx, (B, input_dim), jnp.float32)
    params = init_params(key, input_dim)
    run_params = prepare_params(params)   # bf16 weight masters, cast once

    out = simple_classifier_forward(x, run_params)
    out = jax.block_until_ready(out)
    assert out.shape == (B, 1)

    # Reference 1: same bf16 streaming as the kernel (tight tolerance).
    assert jnp.allclose(out, reference_forward(x, params, True),
                        atol=2e-3, rtol=2e-3)
    # Reference 2: full-f32 PyTorch-equivalent forward (coarse sanity bound).
    assert jnp.allclose(out, reference_forward(x, params, False),
                        atol=5e-2, rtol=5e-2)

    # Exercise the multi-tile path with a ragged last tile (no wrapper pad).
    key, kx2 = jax.random.split(key)
    B2 = 300
    x2 = jax.random.normal(kx2, (B2, input_dim), jnp.float32)
    out2 = jax.block_until_ready(simple_classifier_forward(x2, run_params))
    assert out2.shape == (B2, 1)
    assert jnp.allclose(out2, reference_forward(x2, params, True),
                        atol=2e-3, rtol=2e-3)

    print("KERNEL_OK")
</pallas_src>

<mosaic_0001>
module attributes {stable_mosaic.version = 11 : i64} {
  func.func @mlp_kernel(%arg0: i32, %arg1: memref<128x32xf32, #tpu.memory_space<vmem>>, %arg2: memref<32x128xbf16, #tpu.memory_space<vmem>>, %arg3: memref<1x128xf32, #tpu.memory_space<vmem>>, %arg4: memref<128x64xbf16, #tpu.memory_space<vmem>>, %arg5: memref<1x64xf32, #tpu.memory_space<vmem>>, %arg6: memref<1x64xf32, #tpu.memory_space<vmem>>, %arg7: memref<1x1xf32, #tpu.memory_space<vmem>>, %arg8: memref<1x128xf32, #tpu.memory_space<vmem>>) attributes {dimension_semantics = [#tpu.dimension_semantics<parallel>], iteration_bounds = array<i64: 1>, scalar_prefetch = 0 : i64, scratch_operands = 0 : i64, tpu.core_type = #tpu.core_type<tc>, window_params = [{transform_indices = @transform_0, window_bounds = array<i64: 128, 32>}, {pipeline_mode = #tpu.pipeline_mode<synchronous>, transform_indices = @transform_1, window_bounds = array<i64: 32, 128>}, {pipeline_mode = #tpu.pipeline_mode<synchronous>, transform_indices = @transform_2, window_bounds = array<i64: 1, 128>}, {pipeline_mode = #tpu.pipeline_mode<synchronous>, transform_indices = @transform_3, window_bounds = array<i64: 128, 64>}, {pipeline_mode = #tpu.pipeline_mode<synchronous>, transform_indices = @transform_4, window_bounds = array<i64: 1, 64>}, {pipeline_mode = #tpu.pipeline_mode<synchronous>, transform_indices = @transform_5, window_bounds = array<i64: 1, 64>}, {pipeline_mode = #tpu.pipeline_mode<synchronous>, transform_indices = @transform_6, window_bounds = array<i64: 1, 1>}, {transform_indices = @transform_7, window_bounds = array<i64: 1, 128>}]} {
    %c0 = arith.constant 0 : index
    %c0_0 = arith.constant 0 : index
    %0 = vector.load %arg1[%c0, %c0_0] : memref<128x32xf32, #tpu.memory_space<vmem>>, vector<128x32xf32>
    %1 = arith.truncf %0 : vector<128x32xf32> to vector<128x32xbf16>
    %c0_1 = arith.constant 0 : index
    %c0_2 = arith.constant 0 : index
    %2 = vector.load %arg2[%c0_1, %c0_2] : memref<32x128xbf16, #tpu.memory_space<vmem>>, vector<32x128xbf16>
    %cst = arith.constant dense<0.000000e+00> : vector<128x128xf32>
    %3 = tpu.matmul %1, %2, %cst {dimension_numbers = #tpu.dot_dimension_numbers<[1], [0], [0], [1], [0, 0, 1, 1], [], []>} : vector<128x32xbf16>, vector<32x128xbf16>, vector<128x128xf32> -> vector<128x128xf32>
    %c0_3 = arith.constant 0 : index
    %c0_4 = arith.constant 0 : index
    %4 = vector.load %arg3[%c0_3, %c0_4] : memref<1x128xf32, #tpu.memory_space<vmem>>, vector<1x128xf32>
    %5 = vector.broadcast %4 : vector<1x128xf32> to vector<128x128xf32>
    %6 = arith.addf %3, %5 : vector<128x128xf32>
    %cst_5 = arith.constant 0.000000e+00 : f32
    %7 = vector.broadcast %cst_5 : f32 to vector<128x128xf32>
    %8 = arith.maximumf %6, %7 : vector<128x128xf32>
    %9 = arith.truncf %8 : vector<128x128xf32> to vector<128x128xbf16>
    %c0_6 = arith.constant 0 : index
    %c0_7 = arith.constant 0 : index
    %10 = vector.load %arg4[%c0_6, %c0_7] : memref<128x64xbf16, #tpu.memory_space<vmem>>, vector<128x64xbf16>
    %cst_8 = arith.constant dense<0.000000e+00> : vector<128x64xf32>
    %11 = tpu.matmul %9, %10, %cst_8 {dimension_numbers = #tpu.dot_dimension_numbers<[1], [0], [0], [1], [0, 0, 1, 1], [], []>} : vector<128x128xbf16>, vector<128x64xbf16>, vector<128x64xf32> -> vector<128x64xf32>
    %c0_9 = arith.constant 0 : index
    %c0_10 = arith.constant 0 : index
    %12 = vector.load %arg5[%c0_9, %c0_10] : memref<1x64xf32, #tpu.memory_space<vmem>>, vector<1x64xf32>
    %13 = vector.broadcast %12 : vector<1x64xf32> to vector<128x64xf32>
    %14 = arith.addf %11, %13 : vector<128x64xf32>
    %cst_11 = arith.constant 0.000000e+00 : f32
    %15 = vector.broadcast %cst_11 : f32 to vector<128x64xf32>
    %16 = arith.maximumf %14, %15 : vector<128x64xf32>
    %c0_12 = arith.constant 0 : index
    %c0_13 = arith.constant 0 : index
    %17 = vector.load %arg6[%c0_12, %c0_13] : memref<1x64xf32, #tpu.memory_space<vmem>>, vector<1x64xf32>
    %18 = vector.broadcast %17 : vector<1x64xf32> to vector<128x64xf32>
    %19 = arith.mulf %16, %18 : vector<128x64xf32>
    %cst_14 = arith.constant dense<0.000000e+00> : vector<128xf32>
    %20 = vector.multi_reduction <add>, %19, %cst_14 [1] : vector<128x64xf32> to vector<128xf32>
    %21 = vector.shape_cast %20 : vector<128xf32> to vector<1x128xf32>
    %c0_15 = arith.constant 0 : index
    %c0_16 = arith.constant 0 : index
    %22 = vector.load %arg7[%c0_15, %c0_16] : memref<1x1xf32, #tpu.memory_space<vmem>>, vector<1x1xf32>
    %23 = vector.broadcast %22 : vector<1x1xf32> to vector<1x128xf32>
    %24 = arith.addf %21, %23 : vector<1x128xf32>
    %cst_17 = arith.constant 0.000000e+00 : f32
    %25 = vector.broadcast %cst_17 : f32 to vector<1x128xf32>
    %26 = arith.subf %25, %24 : vector<1x128xf32>
    %27 = math.exp %26 : vector<1x128xf32>
    %cst_18 = arith.constant 1.000000e+00 : f32
    %28 = vector.broadcast %cst_18 : f32 to vector<1x128xf32>
    %29 = arith.addf %28, %27 : vector<1x128xf32>
    %30 = tpu.reciprocal %29 : vector<1x128xf32> -> vector<1x128xf32>
    %c0_19 = arith.constant 0 : index
    %c0_20 = arith.constant 0 : index
    %31 = vector.load %arg8[%c0_19, %c0_20] : memref<1x128xf32, #tpu.memory_space<vmem>>, vector<1x128xf32>
    tpu.vector_store %arg8[%c0_19, %c0_20], %30 {strides = array<i32>} : memref<1x128xf32, #tpu.memory_space<vmem>>, vector<1x128xf32>,
    return
  }
  func.func @transform_0(%arg0: i32) -> (i32, i32) {
    %c0_i32 = arith.constant 0 : i32
    %c0_i32_0 = arith.constant 0 : i32
    return %arg0, %c0_i32 : i32, i32
  }
  func.func @transform_1(%arg0: i32) -> (i32, i32) {
    %c0_i32 = arith.constant 0 : i32
    %c0_i32_0 = arith.constant 0 : i32
    %c0_i32_1 = arith.constant 0 : i32
    return %c0_i32, %c0_i32_0 : i32, i32
  }
  func.func @transform_2(%arg0: i32) -> (i32, i32) {
    %c0_i32 = arith.constant 0 : i32
    %c0_i32_0 = arith.constant 0 : i32
    %c0_i32_1 = arith.constant 0 : i32
    return %c0_i32, %c0_i32_0 : i32, i32
  }
  func.func @transform_3(%arg0: i32) -> (i32, i32) {
    %c0_i32 = arith.constant 0 : i32
    %c0_i32_0 = arith.constant 0 : i32
    %c0_i32_1 = arith.constant 0 : i32
    return %c0_i32, %c0_i32_0 : i32, i32
  }
  func.func @transform_4(%arg0: i32) -> (i32, i32) {
    %c0_i32 = arith.constant 0 : i32
    %c0_i32_0 = arith.constant 0 : i32
    %c0_i32_1 = arith.constant 0 : i32
    return %c0_i32, %c0_i32_0 : i32, i32
  }
  func.func @transform_5(%arg0: i32) -> (i32, i32) {
    %c0_i32 = arith.constant 0 : i32
    %c0_i32_0 = arith.constant 0 : i32
    %c0_i32_1 = arith.constant 0 : i32
    return %c0_i32, %c0_i32_0 : i32, i32
  }
  func.func @transform_6(%arg0: i32) -> (i32, i32) {
    %c0_i32 = arith.constant 0 : i32
    %c0_i32_0 = arith.constant 0 : i32
    %c0_i32_1 = arith.constant 0 : i32
    return %c0_i32, %c0_i32_0 : i32, i32
  }
  func.func @transform_7(%arg0: i32) -> (i32, i32) {
    %c0_i32 = arith.constant 0 : i32
    %c0_i32_0 = arith.constant 0 : i32
    return %c0_i32, %arg0 : i32, i32
  }
}

module attributes {stable_mosaic.version = 11 : i64} {
  func.func @mlp_kernel(%arg0: i32, %arg1: memref<128x32xf32, #tpu.memory_space<vmem>>, %arg2: memref<32x128xbf16, #tpu.memory_space<vmem>>, %arg3: memref<1x128xf32, #tpu.memory_space<vmem>>, %arg4: memref<128x64xbf16, #tpu.memory_space<vmem>>, %arg5: memref<1x64xf32, #tpu.memory_space<vmem>>, %arg6: memref<1x64xf32, #tpu.memory_space<vmem>>, %arg7: memref<1x1xf32, #tpu.memory_space<vmem>>, %arg8: memref<1x128xf32, #tpu.memory_space<vmem>>) attributes {dimension_semantics = [#tpu.dimension_semantics<parallel>], iteration_bounds = array<i64: 1>, scalar_prefetch = 0 : i64, scratch_operands = 0 : i64, tpu.core_type = #tpu.core_type<tc>, window_params = [{transform_indices = @transform_0, window_bounds = array<i64: 128, 32>}, {pipeline_mode = #tpu.pipeline_mode<synchronous>, transform_indices = @transform_1, window_bounds = array<i64: 32, 128>}, {pipeline_mode = #tpu.pipeline_mode<synchronous>, transform_indices = @transform_2, window_bounds = array<i64: 1, 128>}, {pipeline_mode = #tpu.pipeline_mode<synchronous>, transform_indices = @transform_3, window_bounds = array<i64: 128, 64>}, {pipeline_mode = #tpu.pipeline_mode<synchronous>, transform_indices = @transform_4, window_bounds = array<i64: 1, 64>}, {pipeline_mode = #tpu.pipeline_mode<synchronous>, transform_indices = @transform_5, window_bounds = array<i64: 1, 64>}, {pipeline_mode = #tpu.pipeline_mode<synchronous>, transform_indices = @transform_6, window_bounds = array<i64: 1, 1>}, {transform_indices = @transform_7, window_bounds = array<i64: 1, 128>}]} {
    %c0 = arith.constant 0 : index
    %c0_0 = arith.constant 0 : index
    %0 = vector.load %arg1[%c0, %c0_0] : memref<128x32xf32, #tpu.memory_space<vmem>>, vector<128x32xf32>
    %1 = arith.truncf %0 : vector<128x32xf32> to vector<128x32xbf16>
    %c0_1 = arith.constant 0 : index
    %c0_2 = arith.constant 0 : index
    %2 = vector.load %arg2[%c0_1, %c0_2] : memref<32x128xbf16, #tpu.memory_space<vmem>>, vector<32x128xbf16>
    %cst = arith.constant dense<0.000000e+00> : vector<128x128xf32>
    %3 = tpu.matmul %1, %2, %cst {dimension_numbers = #tpu.dot_dimension_numbers<[1], [0], [0], [1], [0, 0, 1, 1], [], []>} : vector<128x32xbf16>, vector<32x128xbf16>, vector<128x128xf32> -> vector<128x128xf32>
    %c0_3 = arith.constant 0 : index
    %c0_4 = arith.constant 0 : index
    %4 = vector.load %arg3[%c0_3, %c0_4] : memref<1x128xf32, #tpu.memory_space<vmem>>, vector<1x128xf32>
    %5 = vector.broadcast %4 : vector<1x128xf32> to vector<128x128xf32>
    %6 = arith.addf %3, %5 : vector<128x128xf32>
    %cst_5 = arith.constant 0.000000e+00 : f32
    %7 = vector.broadcast %cst_5 : f32 to vector<128x128xf32>
    %8 = arith.maximumf %6, %7 : vector<128x128xf32>
    %9 = arith.truncf %8 : vector<128x128xf32> to vector<128x128xbf16>
    %c0_6 = arith.constant 0 : index
    %c0_7 = arith.constant 0 : index
    %10 = vector.load %arg4[%c0_6, %c0_7] : memref<128x64xbf16, #tpu.memory_space<vmem>>, vector<128x64xbf16>
    %cst_8 = arith.constant dense<0.000000e+00> : vector<128x64xf32>
    %11 = tpu.matmul %9, %10, %cst_8 {dimension_numbers = #tpu.dot_dimension_numbers<[1], [0], [0], [1], [0, 0, 1, 1], [], []>} : vector<128x128xbf16>, vector<128x64xbf16>, vector<128x64xf32> -> vector<128x64xf32>
    %c0_9 = arith.constant 0 : index
    %c0_10 = arith.constant 0 : index
    %12 = vector.load %arg5[%c0_9, %c0_10] : memref<1x64xf32, #tpu.memory_space<vmem>>, vector<1x64xf32>
    %13 = vector.broadcast %12 : vector<1x64xf32> to vector<128x64xf32>
    %14 = arith.addf %11, %13 : vector<128x64xf32>
    %cst_11 = arith.constant 0.000000e+00 : f32
    %15 = vector.broadcast %cst_11 : f32 to vector<128x64xf32>
    %16 = arith.maximumf %14, %15 : vector<128x64xf32>
    %c0_12 = arith.constant 0 : index
    %c0_13 = arith.constant 0 : index
    %17 = vector.load %arg6[%c0_12, %c0_13] : memref<1x64xf32, #tpu.memory_space<vmem>>, vector<1x64xf32>
    %18 = vector.broadcast %17 : vector<1x64xf32> to vector<128x64xf32>
    %19 = arith.mulf %16, %18 : vector<128x64xf32>
    %cst_14 = arith.constant dense<0.000000e+00> : vector<128xf32>
    %20 = vector.multi_reduction <add>, %19, %cst_14 [1] : vector<128x64xf32> to vector<128xf32>
    %21 = vector.shape_cast %20 : vector<128xf32> to vector<1x128xf32>
    %c0_15 = arith.constant 0 : index
    %c0_16 = arith.constant 0 : index
    %22 = vector.load %arg7[%c0_15, %c0_16] : memref<1x1xf32, #tpu.memory_space<vmem>>, vector<1x1xf32>
    %23 = vector.broadcast %22 : vector<1x1xf32> to vector<1x128xf32>
    %24 = arith.addf %21, %23 : vector<1x128xf32>
    %cst_17 = arith.constant 0.000000e+00 : f32
    %25 = vector.broadcast %cst_17 : f32 to vector<1x128xf32>
    %26 = arith.subf %25, %24 : vector<1x128xf32>
    %27 = math.exp %26 : vector<1x128xf32>
    %cst_18 = arith.constant 1.000000e+00 : f32
    %28 = vector.broadcast %cst_18 : f32 to vector<1x128xf32>
    %29 = arith.addf %28, %27 : vector<1x128xf32>
    %30 = tpu.reciprocal %29 : vector<1x128xf32> -> vector<1x128xf32>
    %c0_19 = arith.constant 0 : index
    %c0_20 = arith.constant 0 : index
    %31 = vector.load %arg8[%c0_19, %c0_20] : memref<1x128xf32, #tpu.memory_space<vmem>>, vector<1x128xf32>
    tpu.vector_store %arg8[%c0_19, %c0_20], %30 {strides = array<i32>} : memref<1x128xf32, #tpu.memory_space<vmem>>, vector<1x128xf32>,
    return
  }
  func.func @transform_0(%arg0: i32) -> (i32, i32) {
    %c0_i32 = arith.constant 0 : i32
    %c0_i32_0 = arith.constant 0 : i32
    return %arg0, %c0_i32 : i32, i32
  }
  func.func @transform_1(%arg0: i32) -> (i32, i32) {
    %c0_i32 = arith.constant 0 : i32
    %c0_i32_0 = arith.constant 0 : i32
    %c0_i32_1 = arith.constant 0 : i32
    return %c0_i32, %c0_i32_0 : i32, i32
  }
  func.func @transform_2(%arg0: i32) -> (i32, i32) {
    %c0_i32 = arith.constant 0 : i32
    %c0_i32_0 = arith.constant 0 : i32
    %c0_i32_1 = arith.constant 0 : i32
    return %c0_i32, %c0_i32_0 : i32, i32
  }
  func.func @transform_3(%arg0: i32) -> (i32, i32) {
    %c0_i32 = arith.constant 0 : i32
    %c0_i32_0 = arith.constant 0 : i32
    %c0_i32_1 = arith.constant 0 : i32
    return %c0_i32, %c0_i32_0 : i32, i32
  }
  func.func @transform_4(%arg0: i32) -> (i32, i32) {
    %c0_i32 = arith.constant 0 : i32
    %c0_i32_0 = arith.constant 0 : i32
    %c0_i32_1 = arith.constant 0 : i32
    return %c0_i32, %c0_i32_0 : i32, i32
  }
  func.func @transform_5(%arg0: i32) -> (i32, i32) {
    %c0_i32 = arith.constant 0 : i32
    %c0_i32_0 = arith.constant 0 : i32
    %c0_i32_1 = arith.constant 0 : i32
    return %c0_i32, %c0_i32_0 : i32, i32
  }
  func.func @transform_6(%arg0: i32) -> (i32, i32) {
    %c0_i32 = arith.constant 0 : i32
    %c0_i32_0 = arith.constant 0 : i32
    %c0_i32_1 = arith.constant 0 : i32
    return %c0_i32, %c0_i32_0 : i32, i32
  }
  func.func @transform_7(%arg0: i32) -> (i32, i32) {
    %c0_i32 = arith.constant 0 : i32
    %c0_i32_0 = arith.constant 0 : i32
    return %c0_i32, %arg0 : i32, i32
  }
}

</mosaic_0001>

<bundles_post_ra>
// kernel: tpu_custom_call.1
= control target key start
LH: loop header
LB: loop body
LE: loop exit
PB: predicated region body
PF: predicated region fallthrough
CT: control target
= control target key end

     0   :  { %s1206_s0 = inlined_call_operand.vmem [shape: f32[8,32], index: 0, kind: input, shape index: {}]   ;;  %s1207_s1 = inlined_call_operand.vmem [shape: bf16[32,128], index: 1, kind: input, shape index: {}]   ;;  %s1208_s2 = inlined_call_operand.vmem [shape: f32[1,128], index: 2, kind: input, shape index: {}]   ;;  %s1209_s3 = inlined_call_operand.vmem [shape: bf16[128,64], index: 3, kind: input, shape index: {}]   ;;  %s1210_s4 = inlined_call_operand.vmem [shape: f32[1,64], index: 4, kind: input, shape index: {}]   ;;  %s1211_s5 = inlined_call_operand.vmem [shape: f32[1,64], index: 5, kind: input, shape index: {}]   ;;  %s1212_s6 = inlined_call_operand.<no memory space> [shape: f32[1,1], index: 6, kind: input, shape index: {}]   ;;  %s1213_s7 = inlined_call_operand.hbm [shape: f32[1,8], index: 7, kind: output, shape index: {}]  }
   0x1   :  { %v12_v0 = vstv %s1212_s6 }
   0x2   :  { %13 = vst [vmem:[#allocation2] sm:$0x1] %v12_v0 }
   0x3   :  { %v847_v1 = vld [vmem:[%s1207_s1] sm:$0xff]   ;;  %v848_v2 = vld [vmem:[%s1207_s1 + $0x8] sm:$0xff]   ;;  %vm77_vm0 = vcmask 261120   ;;  %v32_v6 = vld [vmem:[%s1206_s0 + $0x10] sm:$0xff] }
   0x4   :  { %775 = vmatprep.subr.bf16.mxu0 %v847_v1  ;;  %v30_v3 = vld [vmem:[%s1206_s0] sm:$0xff]  ;;  %v31_v4 = vld [vmem:[%s1206_s0 + $0x8] sm:$0xff]  ;;  %v33_v7 = vld [vmem:[%s1206_s0 + $0x18] sm:$0xff] }
   0x5   :  { %776 = vmatpush3.bf16.msra.mxu0 %v847_v1  ;;  %v46_v5 = vpack.c.bf16 %v31_v4, %v30_v3  ;;  %v34_v8 = vld [vmem:[%s1206_s0 + $0x20] sm:$0xff]  ;;  %v35_v9 = vld [vmem:[%s1206_s0 + $0x28] sm:$0xff]  ;;  %v47_v10 = vpack.c.bf16 %v33_v7, %v32_v6  ;;  %v36_v13 = vld [vmem:[%s1206_s0 + $0x30] sm:$0xff] }
   0x6   :  { %777 = vmatprep.subr.bf16.mxu0 %v848_v2  ;;  %v48_v11 = vpack.c.bf16 %v35_v9, %v34_v8  ;;  %v849_v12 = vld [vmem:[%s1209_s3] sm:$0xff]   ;;  %v37_v14 = vld [vmem:[%s1206_s0 + $0x38] sm:$0xff]  ;;  %v850_v15 = vld [vmem:[%s1209_s3 + $0x8] sm:$0xff]  }
   0x7   :  { %779 = vmatprep.mubr.msk.bf16.mxu0 %vm77_vm0, %v46_v5  ;;  %v38_v16 = vld [vmem:[%s1206_s0 + $0x40] sm:$0xff]  ;;  %v39_v17 = vld [vmem:[%s1206_s0 + $0x48] sm:$0xff]  ;;  %827 = vmatprep.subr.bf16.mxu1 %v849_v12  ;;  %v851_v18 = vld [vmem:[%s1209_s3 + $0x10] sm:$0xff]   ;;  %v49_v19 = vpack.c.bf16 %v37_v14, %v36_v13 }
   0x8   :  { %835 = vmatpush3.bf16.msra.mxu1 %v849_v12 }
   0x9   :  { %778 = vmatpush3.bf16.msra.mxu0 %v848_v2  ;;  %828 = vmatprep.subr.bf16.mxu1 %v850_v15 }
   0xa   :  { %795 = vmatprep.subr.bf16.mxu0 %v849_v12 }
   0xc   :  { %780 = vmatmul.mubr.msk.bf16.vlgmr.msra.gmra.mrb[0].mxu0 %vm77_vm0, %v47_v10 }
   0xd   :  { %783 = vmatprep.mubr.msk.bf16.mxu0 %vm77_vm0, %v48_v11  ;;  %796 = vmatpush3.bf16.msra.mxu0 %v849_v12 }
   0xe   :  { %797 = vmatprep.subr.bf16.mxu0 %v850_v15 }
   0xf   :  { %14 = vsyncpa [#allocation4], 0  ;;  %v50_v20 = vpack.c.bf16 %v39_v17, %v38_v16  ;;  %v852_v21 = vld [vmem:[%s1209_s3 + $0x18] sm:$0xff]   ;;  %836 = vmatpush3.bf16.msra.mxu1 %v850_v15  ;;  %v40_v22 = vld [vmem:[%s1206_s0 + $0x50] sm:$0xff]  ;;  %vm430_vm1 = vcmask 523264   ;;  %vm612_vm2 = vcmask 130112  }
  0x10   :  { %829 = vmatprep.subr.bf16.mxu1 %v851_v18  ;;  %v41_v23 = vld [vmem:[%s1206_s0 + $0x58] sm:$0xff]  ;;  %v42_v24 = vld [vmem:[%s1206_s0 + $0x60] sm:$0xff]  ;;  %v43_v25 = vld [vmem:[%s1206_s0 + $0x68] sm:$0xff]  ;;  %vm619_vm3 = vcmask 195712   ;;  %vm626_vm4 = vcmask 261312   ;;  %vm633_vm5 = vcmask 326912  }
  0x11   :  { %798 = vmatpush3.bf16.msra.mxu0 %v850_v15  ;;  %v853_v26 = vld [vmem:[%s1209_s3 + $0x20] sm:$0xff]   ;;  %v51_v27 = vpack.c.bf16 %v41_v23, %v40_v22  ;;  %v52_v28 = vpack.c.bf16 %v43_v25, %v42_v24  ;;  %v854_v29 = vld [vmem:[%s1209_s3 + $0x28] sm:$0xff]   ;;  %v44_v30 = vld [vmem:[%s1206_s0 + $0x70] sm:$0xff]  ;;  %vm640_vm6 = vcmask 392512   ;;  %vm647_vm7 = vcmask 458112  }
  0x12   :  { %799 = vmatprep.subr.bf16.mxu0 %v851_v18  ;;  %v45_v31 = vld [vmem:[%s1206_s0 + $0x78] sm:$0xff]  ;;  %v855_v33 = vld [vmem:[%s1209_s3 + $0x30] sm:$0xff]   ;;  %v728_v35 = vld [vmem:[%s1208_s2] ss:$0 sm:$0xff]  ;;  %vm654_vm8 = vcmask 523712   ;;  %vm661_vm9 = vcmask 589312  }
  0x13   :  { %837 = vmatpush3.bf16.msra.mxu1 %v851_v18  ;;  %v53_v32 = vpack.c.bf16 %v45_v31, %v44_v30  ;;  %v856_v34 = vld [vmem:[%s1209_s3 + $0x38] sm:$0xff]   ;;  %vm668_vm10 = vcmask 654912   ;;  %vm675_vm11 = vcmask 720512   ;;  %vm682_vm12 = vcmask 786112  }
  0x14   :  { %784 = vmatmul.mubr.msk.bf16.gmra.mrb[4].mxu0 %vm77_vm0, %v49_v19  ;;  %830 = vmatprep.subr.bf16.mxu1 %v852_v21  ;;  %vm689_vm13 = vcmask 851712   ;;  %vm696_vm14 = vcmask 917312   ;;  %vm703_vm15 = vcmask 982912  }
  0x15   :  { %787 = vmatprep.mubr.msk.bf16.mxu0 %vm77_vm0, %v50_v20  ;;  %800 = vmatpush3.bf16.msra.mxu0 %v851_v18 }
  0x16   :  { %801 = vmatprep.subr.bf16.mxu0 %v852_v21 }
  0x17   :  { %838 = vmatpush3.bf16.msra.mxu1 %v852_v21 }
  0x18   :  { %831 = vmatprep.subr.bf16.mxu1 %v853_v26 }
  0x19   :  { %802 = vmatpush3.bf16.msra.mxu0 %v852_v21 }
  0x1a   :  { %803 = vmatprep.subr.bf16.mxu0 %v853_v26 }
  0x1b   :  { %839 = vmatpush3.bf16.msra.mxu1 %v853_v26 }
  0x1c   :  { %788 = vmatmul.mubr.msk.bf16.gmra.mrb[8].mxu0 %vm77_vm0, %v51_v27  ;;  %832 = vmatprep.subr.bf16.mxu1 %v854_v29 }
  0x1d   :  { %791 = vmatprep.mubr.msk.bf16.mxu0 %vm77_vm0, %v52_v28  ;;  %804 = vmatpush3.bf16.msra.mxu0 %v853_v26  ;;  %v945_v28 = vmov 0  }
  0x1e   :  { %805 = vmatprep.subr.bf16.mxu0 %v854_v29  ;;  %845 = vset.pattern.permute.xlu1 %v945_v28 }
  0x1f   :  { %840 = vmatpush3.bf16.msra.mxu1 %v854_v29  ;;  %846 = vset.pattern.permute.xlu0 %v945_v28 }
  0x20   :  { %833 = vmatprep.subr.bf16.mxu1 %v855_v33 }
  0x21   :  { %806 = vmatpush3.bf16.msra.mxu0 %v854_v29  ;;  %v1082_v29 = vld [vmem:[%s1210_s4] ss:$0 sm:$0xff]  ;;  %s946_s4 = smov [#allocation3]  }
  0x22   :  { %807 = vmatprep.subr.bf16.mxu0 %v855_v33 }
  0x23   :  { %841 = vmatpush3.bf16.msra.mxu1 %v855_v33 }
  0x24   :  { %792 = vmatmul.mubr.msk.bf16.gmra.mrb[12].mxu0 %vm77_vm0, %v53_v32  ;;  %834 = vmatprep.subr.bf16.mxu1 %v856_v34  ;;  %vm710_vm0 = vcmask 1048512  }
  0x25   :  { %808 = vmatpush3.bf16.msra.mxu0 %v855_v33 }
  0x26   :  { %809 = vmatprep.subr.bf16.mxu0 %v856_v34 }
  0x27   :  { %842 = vmatpush3.bf16.msra.mxu1 %v856_v34 }
  0x29   :  { %810 = vmatpush3.bf16.msra.mxu0 %v856_v34 }
  0xdf   :  { %v781_v36 = vpop.f32.mrb[0].mxu0 }
  0xe0   :  { %v145_v37 = vadd.f32 %v781_v36, %v728_v35  ;;  %v136_v38 = vpop.f32.mrb[1].mxu0 }
  0xe1   :  { %v137_v39 = vadd.f32 %v728_v35, %v136_v38  ;;  %v782_v40 = vpop.f32.mrb[2].mxu0 }
  0xe2   :  { %v148_v41 = vadd.f32 %v782_v40, %v728_v35  ;;  %v139_v42 = vpop.f32.mrb[3].mxu0  ;;  %v201_v44 = vmax.f32 %v145_v37, 0.0 }
  0xe3   :  { %v140_v43 = vadd.f32 %v728_v35, %v139_v42  ;;  %v199_v46 = vmax.f32 %v137_v39, 0.0 }
  0xe4   :  { %v202_v45 = vmax.f32 %v148_v41, 0.0 }
  0xe5   :  { %v200_v47 = vmax.f32 %v140_v43, 0.0 }
  0xe6   :  { %v216_v48 = vpack.c.bf16 %v202_v45, %v201_v44 }
  0xe7   :  { %v215_v49 = vpack.c.bf16 %v200_v47, %v199_v46  ;;  %v785_v50 = vpop.f32.mrb[4].mxu0 }
  0xe8   :  { %v161_v51 = vadd.f32 %v785_v50, %v728_v35  ;;  %v152_v52 = vpop.f32.mrb[5].mxu0 }
  0xe9   :  { %v153_v53 = vadd.f32 %v728_v35, %v152_v52  ;;  %v786_v54 = vpop.f32.mrb[6].mxu0  ;;  %811 = vmatprep.mubr.bf16.mxu0 %v215_v49 }
  0xea   :  { %v164_v55 = vadd.f32 %v786_v54, %v728_v35  ;;  %v155_v56 = vpop.f32.mrb[7].mxu0  ;;  %812 = vmatmul.mubr.bf16.vlgmr.msra.gmra.mrb[16].mxu0 %v216_v48  ;;  %v205_v58 = vmax.f32 %v161_v51, 0.0 }
  0xeb   :  { %v156_v57 = vadd.f32 %v728_v35, %v155_v56  ;;  %v203_v60 = vmax.f32 %v153_v53, 0.0 }
  0xec   :  { %v206_v59 = vmax.f32 %v164_v55, 0.0 }
  0xed   :  { %v204_v61 = vmax.f32 %v156_v57, 0.0 }
  0xee   :  { %v218_v62 = vpack.c.bf16 %v206_v59, %v205_v58 }
  0xef   :  { %v217_v63 = vpack.c.bf16 %v204_v61, %v203_v60  ;;  %v789_v0 = vpop.f32.mrb[8].mxu0 }
  0xf0   :  { %v177_v1 = vadd.f32 %v789_v0, %v728_v35  ;;  %v168_v2 = vpop.f32.mrb[9].mxu0 }
  0xf1   :  { %815 = vmatprep.mubr.bf16.mxu1 %v217_v63  ;;  %v169_v3 = vadd.f32 %v728_v35, %v168_v2  ;;  %v790_v4 = vpop.f32.mrb[10].mxu0 }
  0xf2   :  { %816 = vmatmul.mubr.bf16.vlgmr.msra.gmra.mrb[0].mxu1 %v218_v62  ;;  %v209_v5 = vmax.f32 %v177_v1, 0.0  ;;  %v180_v6 = vadd.f32 %v790_v4, %v728_v35  ;;  %v171_v7 = vpop.f32.mrb[11].mxu0 }
  0xf3   :  { %v207_v8 = vmax.f32 %v169_v3, 0.0  ;;  %v172_v9 = vadd.f32 %v728_v35, %v171_v7 }
  0xf4   :  { %v210_v10 = vmax.f32 %v180_v6, 0.0 }
  0xf5   :  { %v208_v11 = vmax.f32 %v172_v9, 0.0 }
  0xf6   :  { %v220_v12 = vpack.c.bf16 %v210_v10, %v209_v5 }
  0xf7   :  { %v219_v13 = vpack.c.bf16 %v208_v11, %v207_v8  ;;  %v793_v14 = vpop.f32.mrb[12].mxu0 }
  0xf8   :  { %v193_v15 = vadd.f32 %v793_v14, %v728_v35  ;;  %v184_v16 = vpop.f32.mrb[13].mxu0 }
  0xf9   :  { %819 = vmatprep.mubr.bf16.mxu1 %v219_v13  ;;  %v185_v17 = vadd.f32 %v728_v35, %v184_v16  ;;  %v794_v18 = vpop.f32.mrb[14].mxu0 }
  0xfa   :  { %820 = vmatmul.mubr.bf16.gmra.mrb[4].mxu1 %v220_v12  ;;  %v213_v19 = vmax.f32 %v193_v15, 0.0  ;;  %v196_v20 = vadd.f32 %v794_v18, %v728_v35  ;;  %v187_v21 = vpop.f32.mrb[15].mxu0 }
  0xfb   :  { %v211_v22 = vmax.f32 %v185_v17, 0.0  ;;  %v188_v23 = vadd.f32 %v728_v35, %v187_v21  ;;  %v1089_v35 = vld [vmem:[%s1211_s5] ss:$0 sm:$0xff]  ;;  %s720_s5 = sshll.u32 %s946_s4, 4  ;;  %s721_s5 = int_to_ptr.vmem [resolvable:$true] %s720_s5 }
  0xfc   :  { %v214_v24 = vmax.f32 %v196_v20, 0.0  ;;  %s921_s8 = scalar_lea.vmem %s721_s5, 16  ;;  %s925_s9 = scalar_lea.vmem %s721_s5, 32 }
  0xfd   :  { %v212_v25 = vmax.f32 %v188_v23, 0.0  ;;  %p922_p0 = scmp.ne.s32.totalorder %s721_s5, %s921_s8  ;;  %p926_p1 = scmp.lt.s32.totalorder %s721_s5, %s721_s5 }
  0xfe   :  { %v222_v26 = vpack.c.bf16 %v214_v24, %v213_v19  ;;  %p927_p2 = scmp.lt.s32.totalorder %s925_s9, %s921_s8 }
  0xff   :  { %v221_v27 = vpack.c.bf16 %v212_v25, %v211_v22 }
 0x100   :  { %p928_p3 = por %p927_p2, %p926_p1 }
 0x101   :  { %823 = vmatprep.mubr.bf16.mxu1 %v221_v27 }
 0x102   :  { %824 = vmatmul.mubr.bf16.gmra.mrb[8].mxu1 %v222_v26  ;;  %p929_p4 = pnand %p928_p3, %p922_p0 }
 0x1bd   :  { %v813_v30 = vpop.f32.mrb[16].mxu0 }
 0x1be   :  { %v337_v31 = vadd.f32 %v813_v30, %v1082_v29  ;;  %v328_v32 = vpop.f32.mrb[17].mxu0 }
 0x1bf   :  { %v329_v33 = vadd.f32 %v1082_v29, %v328_v32  ;;  %v814_v34 = vpop.f32.mrb[18].mxu0 }
 0x1c0   :  { %v393_v36 = vmax.f32 %v337_v31, 0.0  ;;  %v340_v37 = vadd.f32 %v814_v34, %v1082_v29  ;;  %v331_v38 = vpop.f32.mrb[19].mxu0  ;;  %v479_v34 = vld [vmem:[#allocation2] sm:$0x1] }
 0x1c1   :  { %v391_v39 = vmax.f32 %v329_v33, 0.0  ;;  %v332_v40 = vadd.f32 %v1082_v29, %v331_v38 }
 0x1c2   :  { %v394_v41 = vmax.f32 %v340_v37, 0.0  ;;  %v416_v42 = vmul.f32 %v1089_v35, %v393_v36 }
 0x1c3   :  { %v392_v43 = vmax.f32 %v332_v40, 0.0  ;;  %v414_v44 = vmul.f32 %v1089_v35, %v391_v39 }
 0x1c4   :  { %v437_v45 = vsel %vm430_vm1, %v416_v42, 0.0  ;;  %v417_v46 = vmul.f32 %v1089_v35, %v394_v41 }
 0x1c5   :  { %v817_v47 = vpop.f32.mrb[0].mxu1  ;;  %438 = vadd.xlane.f32.xlu1 %v437_v45  ;;  %v431_v48 = vsel %vm430_vm1, %v414_v44, 0.0  ;;  %v415_v49 = vmul.f32 %v1089_v35, %v392_v43 }
 0x1c6   :  { %v353_v50 = vadd.f32 %v817_v47, %v1082_v29  ;;  %v344_v51 = vpop.f32.mrb[1].mxu1  ;;  %432 = vadd.xlane.f32.xlu0 %v431_v48  ;;  %v440_v56 = vsel %vm430_vm1, %v417_v46, 0.0 }
 0x1c7   :  { %v345_v52 = vadd.f32 %v1082_v29, %v344_v51  ;;  %v818_v53 = vpop.f32.mrb[2].mxu1  ;;  %v434_v60 = vsel %vm430_vm1, %v415_v49, 0.0 }
 0x1c8   :  { %v397_v54 = vmax.f32 %v353_v50, 0.0  ;;  %v347_v55 = vpop.f32.mrb[3].mxu1  ;;  %v356_v58 = vadd.f32 %v818_v53, %v1082_v29  ;;  %v485_v53 = vlaneseq }
 0x1c9   :  { %v395_v57 = vmax.f32 %v345_v52, 0.0  ;;  %v348_v59 = vadd.f32 %v1082_v29, %v347_v55  ;;  %441 = vadd.xlane.f32.xlu1 %v440_v56 }
 0x1ca   :  { %435 = vadd.xlane.f32.xlu0 %v434_v60  ;;  %v420_v61 = vmul.f32 %v1089_v35, %v397_v54  ;;  %v398_v0 = vmax.f32 %v356_v58, 0.0  ;;  %v1138_v56 = vshrl.u32 %v485_v53, 7 }
 0x1cb   :  { %v396_v62 = vmax.f32 %v348_v59, 0.0  ;;  %v418_v3 = vmul.f32 %v1089_v35, %v395_v57 }
 0x1cc   :  { %v449_v63 = vsel %vm430_vm1, %v420_v61, 0.0  ;;  %v421_v13 = vmul.f32 %v1089_v35, %v398_v0  ;;  %v487_v58 = vsub.s32 0, %v1138_v56 }
 0x1cd   :  { %v419_v1 = vmul.f32 %v1089_v35, %v396_v62  ;;  %v821_v2 = vpop.f32.mrb[4].mxu1  ;;  %v443_v12 = vsel %vm430_vm1, %v418_v3, 0.0 }
 0x1ce   :  { %450 = vadd.xlane.f32.xlu0 %v449_v63  ;;  %v369_v4 = vadd.f32 %v821_v2, %v1082_v29  ;;  %v360_v5 = vpop.f32.mrb[5].mxu1  ;;  %v452_v19 = vsel %vm430_vm1, %v421_v13, 0.0 }
 0x1cf   :  { %v446_v6 = vsel %vm430_vm1, %v419_v1, 0.0  ;;  %v361_v7 = vadd.f32 %v1082_v29, %v360_v5  ;;  %v822_v8 = vpop.f32.mrb[6].mxu1 }
 0x1d0   :  { %447 = vadd.xlane.f32.xlu1 %v446_v6  ;;  %v401_v9 = vmax.f32 %v369_v4, 0.0  ;;  %v372_v10 = vadd.f32 %v822_v8, %v1082_v29  ;;  %v363_v11 = vpop.f32.mrb[7].mxu1 }
 0x1d1   :  { %v399_v15 = vmax.f32 %v361_v7, 0.0  ;;  %v364_v16 = vadd.f32 %v1082_v29, %v363_v11 }
 0x1d2   :  { %444 = vadd.xlane.f32.xlu0 %v443_v12  ;;  %v402_v14 = vmax.f32 %v372_v10, 0.0  ;;  %v424_v17 = vmul.f32 %v1089_v35, %v401_v9 }
 0x1d3   :  { %v400_v23 = vmax.f32 %v364_v16, 0.0  ;;  %v422_v26 = vmul.f32 %v1089_v35, %v399_v15 }
 0x1d4   :  { %v425_v18 = vmul.f32 %v1089_v35, %v402_v14  ;;  %v461_v24 = vsel %vm430_vm1, %v424_v17, 0.0 }
 0x1d5   :  { %v825_v20 = vpop.f32.mrb[8].mxu1  ;;  %v455_v31 = vsel %vm430_vm1, %v422_v26, 0.0  ;;  %v423_v33 = vmul.f32 %v1089_v35, %v400_v23 }
 0x1d6   :  { %453 = vadd.xlane.f32.xlu0 %v452_v19  ;;  %v376_v21 = vpop.f32.mrb[9].mxu1  ;;  %v464_v22 = vsel %vm430_vm1, %v425_v18, 0.0  ;;  %v385_v25 = vadd.f32 %v825_v20, %v1082_v29 }
 0x1d7   :  { %v826_v27 = vpop.f32.mrb[10].mxu1  ;;  %v377_v32 = vadd.f32 %v1082_v29, %v376_v21  ;;  %v458_v37 = vsel %vm430_vm1, %v423_v33, 0.0 }
 0x1d8   :  { %v379_v28 = vpop.f32.mrb[11].mxu1  ;;  %v405_v30 = vmax.f32 %v385_v25, 0.0  ;;  %v388_v40 = vadd.f32 %v826_v27, %v1082_v29 }
 0x1d9   :  { %v403_v36 = vmax.f32 %v377_v32, 0.0  ;;  %v380_v38 = vadd.f32 %v1082_v29, %v379_v28 }
 0x1da   :  { %462 = vadd.xlane.f32.xlu0 %v461_v24  ;;  %v428_v39 = vmul.f32 %v1089_v35, %v405_v30  ;;  %v406_v44 = vmax.f32 %v388_v40, 0.0 }
 0x1db   :  { %v404_v41 = vmax.f32 %v380_v38, 0.0  ;;  %v426_v43 = vmul.f32 %v1089_v35, %v403_v36 }
 0x1dc   :  { %v473_v42 = vsel %vm430_vm1, %v428_v39, 0.0  ;;  %v429_v48 = vmul.f32 %v1089_v35, %v406_v44 }
 0x1dd   :  { %v467_v45 = vsel %vm430_vm1, %v426_v43, 0.0  ;;  %v427_v46 = vmul.f32 %v1089_v35, %v404_v41 }
 0x1de   :  { %456 = vadd.xlane.f32.xlu0 %v455_v31  ;;  %v476_v49 = vsel %vm430_vm1, %v429_v48, 0.0 }
 0x1df   :  { %v470_v47 = vsel %vm430_vm1, %v427_v46, 0.0 }
 0x1e1   :  { %482 = vperm.xlu1 %845, %v479_v34  }
 0x1e2   :  { %459 = vadd.xlane.f32.xlu0 %v458_v37 }
 0x1e6   :  { %474 = vadd.xlane.f32.xlu0 %v473_v42 }
 0x1ea   :  { %468 = vadd.xlane.f32.xlu0 %v467_v45  ;;  %v1157_v45 = vand.u32 127, %v485_v53 }
 0x1ee   :  { %471 = vadd.xlane.f32.xlu0 %v470_v47 }
 0x1f2   :  { %477 = vadd.xlane.f32.xlu0 %v476_v49 }
 0x205   :  { %465 = vadd.xlane.f32.xlu1 %v464_v22 }
 0x252   :  { %v439_v29 = vpop.xlane.xlu1 %438 }
 0x253   :  { %v433_v50 = vpop.xlane.xlu0 %432 }
 0x256   :  { %v442_v52 = vpop.xlane.xlu1 %441 }
 0x257   :  { %v436_v51 = vpop.xlane.xlu0 %435 }
 0x25b   :  { %v451_v54 = vpop.xlane.xlu0 %450 }
 0x25d   :  { %v448_v55 = vpop.xlane.xlu1 %447 }
 0x25f   :  { %v445_v57 = vpop.xlane.xlu0 %444 }
 0x261   :  { %v483_v59 = vpop.permute.xlu1 %482 }
 0x262   :  { %v1141_v60 = vrot.slane %v483_v59, %v487_v58 }
 0x263   :  { %v454_v35 = vpop.xlane.xlu0 %453 }
 0x264   :  { %v489_v62 = vadd.f32 %v1141_v60, %v433_v50  ;;  %v490_v0 = vadd.f32 %v1141_v60, %v436_v51  ;;  %v491_v1 = vadd.f32 %v1141_v60, %v439_v29  ;;  %v492_v7 = vadd.f32 %v1141_v60, %v442_v52 }
 0x265   :  { %v493_v10 = vadd.f32 %v1141_v60, %v445_v57  ;;  %v494_v13 = vadd.f32 %v1141_v60, %v448_v55  ;;  %v495_v14 = vadd.f32 %v1141_v60, %v451_v54  ;;  %v496_v19 = vadd.f32 %v1141_v60, %v454_v35 }
 0x266   :  { %v505_v2 = vsub.f32 0.0, %v489_v62  ;;  %v506_v3 = vsub.f32 0.0, %v490_v0  ;;  %v507_v5 = vsub.f32 0.0, %v491_v1  ;;  %v508_v12 = vsub.f32 0.0, %v492_v7 }
 0x267   :  { %v463_v61 = vpop.xlane.xlu0 %462  ;;  %v509_v15 = vsub.f32 0.0, %v493_v10  ;;  %v510_v18 = vsub.f32 0.0, %v494_v13  ;;  %v511_v20 = vsub.f32 0.0, %v495_v14  ;;  %v512_v27 = vsub.f32 0.0, %v496_v19 }
 0x268   :  { %v521_v6 = vmul.f32 1.442695, %v505_v2  ;;  %v523_v8 = vmul.f32 1.442695, %v506_v3  ;;  %v525_v11 = vmul.f32 1.442695, %v507_v5  ;;  %v499_v36 = vadd.f32 %v1141_v60, %v463_v61 }
 0x269   :  { %v527_v16 = vmul.f32 1.442695, %v508_v12  ;;  %v529_v21 = vmul.f32 1.442695, %v509_v15  ;;  %v531_v26 = vmul.f32 1.442695, %v510_v18  ;;  %v605_v2 = vsub.s32 %v1157_v45, %v1138_v56 }
 0x26a   :  { %857 = vpow2.f32 %v521_v6  ;;  %v533_v30 = vmul.f32 1.442695, %v511_v20  ;;  %v535_v38 = vmul.f32 1.442695, %v512_v27  ;;  %v515_v46 = vsub.f32 0.0, %v499_v36 }
 0x26b   :  { %v457_v63 = vpop.xlane.xlu0 %456  ;;  %859 = vpow2.f32 %v523_v8  ;;  %v607_v57 = vadd.s32 4294967288, %v1157_v45  ;;  %v621_v12 = vadd.s32 4294967272, %v1157_v45 }
 0x26c   :  { %861 = vpow2.f32 %v525_v11  ;;  %v497_v23 = vadd.f32 %v1141_v60, %v457_v63  ;;  %v541_v54 = vmul.f32 1.442695, %v515_v46  ;;  %v614_v63 = vadd.s32 4294967280, %v1157_v45 }
 0x26d   :  { %863 = vpow2.f32 %v527_v16  ;;  %v610_v3 = vsub.s32 %v607_v57, %v1138_v56 }
 0x26e   :  { %865 = vpow2.f32 %v529_v21  ;;  %v513_v33 = vsub.f32 0.0, %v497_v23  ;;  %v617_v11 = vsub.s32 %v614_v63, %v1138_v56 }
 0x26f   :  { %v460_v4 = vpop.xlane.xlu0 %459  ;;  %867 = vpow2.f32 %v531_v26 }
 0x270   :  { %v498_v25 = vadd.f32 %v1141_v60, %v460_v4  ;;  %869 = vpow2.f32 %v533_v30  ;;  %v537_v41 = vmul.f32 1.442695, %v513_v33 }
 0x272   :  { %v514_v37 = vsub.f32 0.0, %v498_v25 }
 0x273   :  { %v475_v9 = vpop.xlane.xlu0 %474 }
 0x274   :  { %v858_v22 = vpop.eup %857  ;;  %v539_v47 = vmul.f32 1.442695, %v514_v37  ;;  %v503_v48 = vadd.f32 %v1141_v60, %v475_v9  ;;  %v642_v37 = vadd.s32 4294967248, %v1157_v45 }
 0x275   :  { %v860_v24 = vpop.eup %859  ;;  %v553_v31 = vadd.f32 1.0, %v858_v22  ;;  %v624_v22 = vsub.s32 %v621_v12, %v1138_v56 }
 0x276   :  { %v862_v32 = vpop.eup %861  ;;  %v554_v34 = vadd.f32 1.0, %v860_v24  ;;  %v519_v55 = vsub.f32 0.0, %v503_v48 }
 0x277   :  { %v469_v17 = vpop.xlane.xlu0 %468  ;;  %v555_v40 = vadd.f32 1.0, %v862_v32  ;;  %871 = vrcp.f32 %v553_v31  ;;  %v864_v44 = vpop.eup %863 }
 0x278   :  { %v501_v39 = vadd.f32 %v1141_v60, %v469_v17  ;;  %873 = vrcp.f32 %v554_v34  ;;  %v866_v50 = vpop.eup %865  ;;  %v556_v52 = vadd.f32 1.0, %v864_v44  ;;  %v549_v1 = vmul.f32 1.442695, %v519_v55 }
 0x279   :  { %875 = vpow2.f32 %v535_v38  ;;  %v868_v58 = vpop.eup %867  ;;  %v557_v35 = vadd.f32 1.0, %v866_v50 }
 0x27a   :  { %v517_v49 = vsub.f32 0.0, %v501_v39  ;;  %877 = vrcp.f32 %v555_v40  ;;  %v870_v61 = vpop.eup %869  ;;  %v558_v6 = vadd.f32 1.0, %v868_v58 }
 0x27b   :  { %v472_v28 = vpop.xlane.xlu0 %471  ;;  %879 = vpow2.f32 %v537_v41  ;;  %v559_v10 = vadd.f32 1.0, %v870_v61 }
 0x27c   :  { %v502_v42 = vadd.f32 %v1141_v60, %v472_v28  ;;  %881 = vpow2.f32 %v539_v47  ;;  %v545_v53 = vmul.f32 1.442695, %v517_v49  ;;  %v635_v28 = vadd.s32 4294967256, %v1157_v45 }
 0x27d   :  { %883 = vrcp.f32 %v556_v52  ;;  %v649_v47 = vadd.s32 4294967240, %v1157_v45 }
 0x27e   :  { %v518_v51 = vsub.f32 0.0, %v502_v42  ;;  %885 = vpow2.f32 %v541_v54  ;;  %v638_v41 = vsub.s32 %v635_v28, %v1138_v56  ;;  %v663_v54 = vadd.s32 4294967224, %v1157_v45 }
 0x27f   :  { %v478_v43 = vpop.xlane.xlu0 %477  ;;  %887 = vpow2.f32 %v545_v53 }
 0x280   :  { %v504_v29 = vadd.f32 %v1141_v60, %v478_v43  ;;  %v547_v62 = vmul.f32 1.442695, %v518_v51  ;;  %889 = vrcp.f32 %v557_v35  ;;  %v645_v51 = vsub.s32 %v642_v37, %v1138_v56 }
 0x281   :  { %v872_v0 = vpop.eup %871 }
 0x282   :  { %v520_v59 = vsub.f32 0.0, %v504_v29  ;;  %v874_v4 = vpop.eup %873  ;;  %891 = vpow2.f32 %v547_v62  ;;  %v606_v15 = vrot.slane %v872_v0, %v605_v2  ;;  %v656_v29 = vadd.s32 4294967232, %v1157_v45 }
 0x283   :  { %v876_v9 = vpop.eup %875  ;;  %893 = vpow2.f32 %v549_v1  ;;  %v611_v16 = vrot.slane %v874_v4, %v610_v3  ;;  %v666_v1 = vsub.s32 %v663_v54, %v1138_v56  ;;  %v670_v3 = vadd.s32 4294967216, %v1157_v45 }
 0x284   :  { %v551_v7 = vmul.f32 1.442695, %v520_v59  ;;  %v878_v13 = vpop.eup %877  ;;  %895 = vrcp.f32 %v558_v6  ;;  %v560_v20 = vadd.f32 1.0, %v876_v9  ;;  %v652_v59 = vsub.s32 %v649_v47, %v1138_v56 }
 0x285   :  { %v880_v17 = vpop.eup %879  ;;  %v618_v21 = vrot.slane %v878_v13, %v617_v11  ;;  %v613_v24 = vsel %vm612_vm2, %v611_v16, %v606_v15  ;;  %v659_v62 = vsub.s32 %v656_v29, %v1138_v56  ;;  %v677_v6 = vadd.s32 4294967208, %v1157_v45 }
 0x286   :  { %v882_v18 = vpop.eup %881  ;;  %897 = vpow2.f32 %v551_v7  ;;  %v561_v23 = vadd.f32 1.0, %v880_v17  ;;  %v691_v11 = vadd.s32 4294967192, %v1157_v45  ;;  %v673_v12 = vsub.s32 %v670_v3, %v1138_v56 }
 0x287   :  { %899 = vrcp.f32 %v559_v10  ;;  %v884_v25 = vpop.eup %883  ;;  %v562_v26 = vadd.f32 1.0, %v882_v18  ;;  %v620_v31 = vsel %vm619_vm3, %v618_v21, %v613_v24  ;;  %v698_v13 = vadd.s32 4294967184, %v1157_v45 }
 0x288   :  { %v886_v27 = vpop.eup %885  ;;  %v625_v34 = vrot.slane %v884_v25, %v624_v22  ;;  %v680_v15 = vsub.s32 %v677_v6, %v1138_v56  ;;  %v705_v16 = vadd.s32 4294967176, %v1157_v45  ;;  %v694_v21 = vsub.s32 %v691_v11, %v1138_v56 }
 0x289   :  { %v888_v30 = vpop.eup %887  ;;  %v563_v39 = vadd.f32 1.0, %v886_v27  ;;  %v701_v24 = vsub.s32 %v698_v13, %v1138_v56 }
 0x28a   :  { %v890_v33 = vpop.eup %889  ;;  %v627_v40 = vsel %vm626_vm4, %v625_v34, %v620_v31  ;;  %v565_v43 = vadd.f32 1.0, %v888_v30  ;;  %v708_v27 = vsub.s32 %v705_v16, %v1138_v56 }
 0x28c   :  { %v892_v36 = vpop.eup %891 }
 0x28d   :  { %v894_v38 = vpop.eup %893  ;;  %v566_v48 = vadd.f32 1.0, %v892_v36 }
 0x28e   :  { %v896_v42 = vpop.eup %895  ;;  %v567_v55 = vadd.f32 1.0, %v894_v38 }
 0x28f   :  { %v639_v57 = vrot.slane %v896_v42, %v638_v41 }
 0x290   :  { %v898_v46 = vpop.eup %897 }
 0x291   :  { %v900_v49 = vpop.eup %899  ;;  %v568_v53 = vadd.f32 1.0, %v898_v46 }
 0x292   :  { %v466_v5 = vpop.xlane.xlu1 %465  ;;  %v646_v63 = vrot.slane %v900_v49, %v645_v51 }
 0x293   :  { %v500_v8 = vadd.f32 %v1141_v60, %v466_v5  ;;  %v628_v60 = vadd.s32 4294967264, %v1157_v45 }
 0x295   :  { %v516_v14 = vsub.f32 0.0, %v500_v8  ;;  %v631_v32 = vsub.s32 %v628_v60, %v1138_v56  ;;  %v684_v8 = vadd.s32 4294967200, %v1157_v45 }
 0x297   :  { %v543_v19 = vmul.f32 1.442695, %v516_v14  ;;  %v632_v44 = vrot.slane %v890_v33, %v631_v32 }
 0x299   :  { %901 = vpow2.f32 %v543_v19  ;;  %v634_v50 = vsel %vm633_vm5, %v632_v44, %v627_v40  ;;  %v687_v19 = vsub.s32 %v684_v8, %v1138_v56 }
 0x29a   :  { %903 = vrcp.f32 %v560_v20  ;;  %v641_v35 = vsel %vm640_vm6, %v639_v57, %v634_v50 }
 0x29b   :  { %905 = vrcp.f32 %v561_v23  ;;  %v648_v4 = vsel %vm647_vm7, %v646_v63, %v641_v35 }
 0x29c   :  { %907 = vrcp.f32 %v562_v26 }
 0x29d   :  { %909 = vrcp.f32 %v563_v39 }
 0x29e   :  { %911 = vrcp.f32 %v565_v43 }
 0x29f   :  { %913 = vrcp.f32 %v566_v48 }
 0x2a3   :  { %v902_v52 = vpop.eup %901 }
 0x2a4   :  { %v564_v58 = vadd.f32 1.0, %v902_v52  ;;  %v904_v61 = vpop.eup %903 }
 0x2a5   :  { %v906_v0 = vpop.eup %905  ;;  %v653_v5 = vrot.slane %v904_v61, %v652_v59 }
 0x2a6   :  { %915 = vrcp.f32 %v564_v58  ;;  %v908_v2 = vpop.eup %907  ;;  %v660_v7 = vrot.slane %v906_v0, %v659_v62 }
 0x2a7   :  { %917 = vrcp.f32 %v567_v55  ;;  %v667_v9 = vrot.slane %v908_v2, %v666_v1  ;;  %v655_v10 = vsel %vm654_vm8, %v653_v5, %v648_v4  ;;  %v910_v14 = vpop.eup %909 }
 0x2a8   :  { %919 = vrcp.f32 %v568_v53  ;;  %v912_v17 = vpop.eup %911  ;;  %v662_v18 = vsel %vm661_vm9, %v660_v7, %v655_v10  ;;  %v674_v23 = vrot.slane %v910_v14, %v673_v12 }
 0x2a9   :  { %v914_v60 = vpop.eup %913  ;;  %v669_v20 = vsel %vm668_vm10, %v667_v9, %v662_v18  ;;  %v688_v30 = vrot.slane %v912_v17, %v687_v19 }
 0x2aa   :  { %v676_v28 = vsel %vm675_vm11, %v674_v23, %v669_v20  ;;  %v695_v32 = vrot.slane %v914_v60, %v694_v21 }
 0x2b0   :  { %v916_v22 = vpop.eup %915 }
 0x2b1   :  { %v918_v25 = vpop.eup %917  ;;  %v681_v26 = vrot.slane %v916_v22, %v680_v15 }
 0x2b2   :  { %v920_v45 = vpop.eup %919  ;;  %v702_v34 = vrot.slane %v918_v25, %v701_v24 }
 0x2b3   :  { %v683_v31 = vsel %vm682_vm12, %v681_v26, %v676_v28  ;;  %v709_v37 = vrot.slane %v920_v45, %v708_v27 }
 0x2b4   :  { %v690_v33 = vsel %vm689_vm13, %v688_v30, %v683_v31 }
 0x2b5   :  { %v697_v36 = vsel %vm696_vm14, %v695_v32, %v690_v33 }
 0x2b6   :  { %v704_v38 = vsel %vm703_vm15, %v702_v34, %v697_v36 }
 0x2b7   :  { %v711_v39 = vsel %vm710_vm0, %v709_v37, %v704_v38 }
 0x2b8   :  { %713 = vst [vmem:[#allocation3] sm:$0x1] %v711_v39 }
 0x2b9   :  { %932 = shalt.err (!%p929_p4)
}
 0x2ba   :  { %s933_s11 = scalar_lea.hbm %s1213_s7, 16 }
 0x2bb   :  { %p934_p5 = scmp.ne.s32.totalorder %s1213_s7, %s933_s11  ;;  %p937_p6 = scmp.lt.u32.totalorder %s933_s11, %s1213_s7 }
 0x2bd   :  { %p939_p7 = pnand %p937_p6, %p934_p5 }
 0x2bf   :  { %942 = shalt.err (!%p939_p7)
}
 0x2c0   :  { %723 = dma.vmem_to_hbm [thread:$0]  %s721_s5, 16, %s1213_s7, [#allocation4]  }
 0x2c1   :  { %943 = dma.done.wait [#allocation4], 16  }
 0x2c2   :  { %944 = vsyncadd [#allocation4], 4294967280 }
 0x2c3   :  { %727 = vsyncpa [#allocation4], 1 }

// kernel: tpu_custom_call.1
= control target key start
LH: loop header
LB: loop body
LE: loop exit
PB: predicated region body
PF: predicated region fallthrough
CT: control target
= control target key end

     0   :  { %s1206_s0 = inlined_call_operand.vmem [shape: f32[8,32], index: 0, kind: input, shape index: {}]   ;;  %s1207_s1 = inlined_call_operand.vmem [shape: bf16[32,128], index: 1, kind: input, shape index: {}]   ;;  %s1208_s2 = inlined_call_operand.vmem [shape: f32[1,128], index: 2, kind: input, shape index: {}]   ;;  %s1209_s3 = inlined_call_operand.vmem [shape: bf16[128,64], index: 3, kind: input, shape index: {}]   ;;  %s1210_s4 = inlined_call_operand.vmem [shape: f32[1,64], index: 4, kind: input, shape index: {}]   ;;  %s1211_s5 = inlined_call_operand.vmem [shape: f32[1,64], index: 5, kind: input, shape index: {}]   ;;  %s1212_s6 = inlined_call_operand.<no memory space> [shape: f32[1,1], index: 6, kind: input, shape index: {}]   ;;  %s1213_s7 = inlined_call_operand.hbm [shape: f32[1,8], index: 7, kind: output, shape index: {}]  }
   0x1   :  { %v12_v0 = vstv %s1212_s6 }
   0x2   :  { %13 = vst [vmem:[#allocation2] sm:$0x1] %v12_v0 }
   0x3   :  { %v847_v1 = vld [vmem:[%s1207_s1] sm:$0xff]   ;;  %v848_v2 = vld [vmem:[%s1207_s1 + $0x8] sm:$0xff]   ;;  %vm77_vm0 = vcmask 261120   ;;  %v32_v6 = vld [vmem:[%s1206_s0 + $0x10] sm:$0xff] }
   0x4   :  { %775 = vmatprep.subr.bf16.mxu0 %v847_v1  ;;  %v30_v3 = vld [vmem:[%s1206_s0] sm:$0xff]  ;;  %v31_v4 = vld [vmem:[%s1206_s0 + $0x8] sm:$0xff]  ;;  %v33_v7 = vld [vmem:[%s1206_s0 + $0x18] sm:$0xff] }
   0x5   :  { %776 = vmatpush3.bf16.msra.mxu0 %v847_v1  ;;  %v46_v5 = vpack.c.bf16 %v31_v4, %v30_v3  ;;  %v34_v8 = vld [vmem:[%s1206_s0 + $0x20] sm:$0xff]  ;;  %v35_v9 = vld [vmem:[%s1206_s0 + $0x28] sm:$0xff]  ;;  %v47_v10 = vpack.c.bf16 %v33_v7, %v32_v6  ;;  %v36_v13 = vld [vmem:[%s1206_s0 + $0x30] sm:$0xff] }
   0x6   :  { %777 = vmatprep.subr.bf16.mxu0 %v848_v2  ;;  %v48_v11 = vpack.c.bf16 %v35_v9, %v34_v8  ;;  %v849_v12 = vld [vmem:[%s1209_s3] sm:$0xff]   ;;  %v37_v14 = vld [vmem:[%s1206_s0 + $0x38] sm:$0xff]  ;;  %v850_v15 = vld [vmem:[%s1209_s3 + $0x8] sm:$0xff]  }
   0x7   :  { %779 = vmatprep.mubr.msk.bf16.mxu0 %vm77_vm0, %v46_v5  ;;  %v38_v16 = vld [vmem:[%s1206_s0 + $0x40] sm:$0xff]  ;;  %v39_v17 = vld [vmem:[%s1206_s0 + $0x48] sm:$0xff]  ;;  %827 = vmatprep.subr.bf16.mxu1 %v849_v12  ;;  %v851_v18 = vld [vmem:[%s1209_s3 + $0x10] sm:$0xff]   ;;  %v49_v19 = vpack.c.bf16 %v37_v14, %v36_v13 }
   0x8   :  { %835 = vmatpush3.bf16.msra.mxu1 %v849_v12 }
   0x9   :  { %778 = vmatpush3.bf16.msra.mxu0 %v848_v2  ;;  %828 = vmatprep.subr.bf16.mxu1 %v850_v15 }
   0xa   :  { %795 = vmatprep.subr.bf16.mxu0 %v849_v12 }
   0xc   :  { %780 = vmatmul.mubr.msk.bf16.vlgmr.msra.gmra.mrb[0].mxu0 %vm77_vm0, %v47_v10 }
   0xd   :  { %783 = vmatprep.mubr.msk.bf16.mxu0 %vm77_vm0, %v48_v11  ;;  %796 = vmatpush3.bf16.msra.mxu0 %v849_v12 }
   0xe   :  { %797 = vmatprep.subr.bf16.mxu0 %v850_v15 }
   0xf   :  { %14 = vsyncpa [#allocation4], 0  ;;  %v50_v20 = vpack.c.bf16 %v39_v17, %v38_v16  ;;  %v852_v21 = vld [vmem:[%s1209_s3 + $0x18] sm:$0xff]   ;;  %836 = vmatpush3.bf16.msra.mxu1 %v850_v15  ;;  %v40_v22 = vld [vmem:[%s1206_s0 + $0x50] sm:$0xff]  ;;  %vm430_vm1 = vcmask 523264   ;;  %vm612_vm2 = vcmask 130112  }
  0x10   :  { %829 = vmatprep.subr.bf16.mxu1 %v851_v18  ;;  %v41_v23 = vld [vmem:[%s1206_s0 + $0x58] sm:$0xff]  ;;  %v42_v24 = vld [vmem:[%s1206_s0 + $0x60] sm:$0xff]  ;;  %v43_v25 = vld [vmem:[%s1206_s0 + $0x68] sm:$0xff]  ;;  %vm619_vm3 = vcmask 195712   ;;  %vm626_vm4 = vcmask 261312   ;;  %vm633_vm5 = vcmask 326912  }
  0x11   :  { %798 = vmatpush3.bf16.msra.mxu0 %v850_v15  ;;  %v853_v26 = vld [vmem:[%s1209_s3 + $0x20] sm:$0xff]   ;;  %v51_v27 = vpack.c.bf16 %v41_v23, %v40_v22  ;;  %v52_v28 = vpack.c.bf16 %v43_v25, %v42_v24  ;;  %v854_v29 = vld [vmem:[%s1209_s3 + $0x28] sm:$0xff]   ;;  %v44_v30 = vld [vmem:[%s1206_s0 + $0x70] sm:$0xff]  ;;  %vm640_vm6 = vcmask 392512   ;;  %vm647_vm7 = vcmask 458112  }
  0x12   :  { %799 = vmatprep.subr.bf16.mxu0 %v851_v18  ;;  %v45_v31 = vld [vmem:[%s1206_s0 + $0x78] sm:$0xff]  ;;  %v855_v33 = vld [vmem:[%s1209_s3 + $0x30] sm:$0xff]   ;;  %v728_v35 = vld [vmem:[%s1208_s2] ss:$0 sm:$0xff]  ;;  %vm654_vm8 = vcmask 523712   ;;  %vm661_vm9 = vcmask 589312  }
  0x13   :  { %837 = vmatpush3.bf16.msra.mxu1 %v851_v18  ;;  %v53_v32 = vpack.c.bf16 %v45_v31, %v44_v30  ;;  %v856_v34 = vld [vmem:[%s1209_s3 + $0x38] sm:$0xff]   ;;  %vm668_vm10 = vcmask 654912   ;;  %vm675_vm11 = vcmask 720512   ;;  %vm682_vm12 = vcmask 786112  }
  0x14   :  { %784 = vmatmul.mubr.msk.bf16.gmra.mrb[4].mxu0 %vm77_vm0, %v49_v19  ;;  %830 = vmatprep.subr.bf16.mxu1 %v852_v21  ;;  %vm689_vm13 = vcmask 851712   ;;  %vm696_vm14 = vcmask 917312   ;;  %vm703_vm15 = vcmask 982912  }
  0x15   :  { %787 = vmatprep.mubr.msk.bf16.mxu0 %vm77_vm0, %v50_v20  ;;  %800 = vmatpush3.bf16.msra.mxu0 %v851_v18 }
  0x16   :  { %801 = vmatprep.subr.bf16.mxu0 %v852_v21 }
  0x17   :  { %838 = vmatpush3.bf16.msra.mxu1 %v852_v21 }
  0x18   :  { %831 = vmatprep.subr.bf16.mxu1 %v853_v26 }
  0x19   :  { %802 = vmatpush3.bf16.msra.mxu0 %v852_v21 }
  0x1a   :  { %803 = vmatprep.subr.bf16.mxu0 %v853_v26 }
  0x1b   :  { %839 = vmatpush3.bf16.msra.mxu1 %v853_v26 }
  0x1c   :  { %788 = vmatmul.mubr.msk.bf16.gmra.mrb[8].mxu0 %vm77_vm0, %v51_v27  ;;  %832 = vmatprep.subr.bf16.mxu1 %v854_v29 }
  0x1d   :  { %791 = vmatprep.mubr.msk.bf16.mxu0 %vm77_vm0, %v52_v28  ;;  %804 = vmatpush3.bf16.msra.mxu0 %v853_v26  ;;  %v945_v28 = vmov 0  }
  0x1e   :  { %805 = vmatprep.subr.bf16.mxu0 %v854_v29  ;;  %845 = vset.pattern.permute.xlu1 %v945_v28 }
  0x1f   :  { %840 = vmatpush3.bf16.msra.mxu1 %v854_v29  ;;  %846 = vset.pattern.permute.xlu0 %v945_v28 }
  0x20   :  { %833 = vmatprep.subr.bf16.mxu1 %v855_v33 }
  0x21   :  { %806 = vmatpush3.bf16.msra.mxu0 %v854_v29  ;;  %v1082_v29 = vld [vmem:[%s1210_s4] ss:$0 sm:$0xff]  ;;  %s946_s4 = smov [#allocation3]  }
  0x22   :  { %807 = vmatprep.subr.bf16.mxu0 %v855_v33 }
  0x23   :  { %841 = vmatpush3.bf16.msra.mxu1 %v855_v33 }
  0x24   :  { %792 = vmatmul.mubr.msk.bf16.gmra.mrb[12].mxu0 %vm77_vm0, %v53_v32  ;;  %834 = vmatprep.subr.bf16.mxu1 %v856_v34  ;;  %vm710_vm0 = vcmask 1048512  }
  0x25   :  { %808 = vmatpush3.bf16.msra.mxu0 %v855_v33 }
  0x26   :  { %809 = vmatprep.subr.bf16.mxu0 %v856_v34 }
  0x27   :  { %842 = vmatpush3.bf16.msra.mxu1 %v856_v34 }
  0x29   :  { %810 = vmatpush3.bf16.msra.mxu0 %v856_v34 }
  0xdf   :  { %v781_v36 = vpop.f32.mrb[0].mxu0 }
  0xe0   :  { %v145_v37 = vadd.f32 %v781_v36, %v728_v35  ;;  %v136_v38 = vpop.f32.mrb[1].mxu0 }
  0xe1   :  { %v137_v39 = vadd.f32 %v728_v35, %v136_v38  ;;  %v782_v40 = vpop.f32.mrb[2].mxu0 }
  0xe2   :  { %v148_v41 = vadd.f32 %v782_v40, %v728_v35  ;;  %v139_v42 = vpop.f32.mrb[3].mxu0  ;;  %v201_v44 = vmax.f32 %v145_v37, 0.0 }
  0xe3   :  { %v140_v43 = vadd.f32 %v728_v35, %v139_v42  ;;  %v199_v46 = vmax.f32 %v137_v39, 0.0 }
  0xe4   :  { %v202_v45 = vmax.f32 %v148_v41, 0.0 }
  0xe5   :  { %v200_v47 = vmax.f32 %v140_v43, 0.0 }
  0xe6   :  { %v216_v48 = vpack.c.bf16 %v202_v45, %v201_v44 }
  0xe7   :  { %v215_v49 = vpack.c.bf16 %v200_v47, %v199_v46  ;;  %v785_v50 = vpop.f32.mrb[4].mxu0 }
  0xe8   :  { %v161_v51 = vadd.f32 %v785_v50, %v728_v35  ;;  %v152_v52 = vpop.f32.mrb[5].mxu0 }
  0xe9   :  { %v153_v53 = vadd.f32 %v728_v35, %v152_v52  ;;  %v786_v54 = vpop.f32.mrb[6].mxu0  ;;  %811 = vmatprep.mubr.bf16.mxu0 %v215_v49 }
  0xea   :  { %v164_v55 = vadd.f32 %v786_v54, %v728_v35  ;;  %v155_v56 = vpop.f32.mrb[7].mxu0  ;;  %812 = vmatmul.mubr.bf16.vlgmr.msra.gmra.mrb[16].mxu0 %v216_v48  ;;  %v205_v58 = vmax.f32 %v161_v51, 0.0 }
  0xeb   :  { %v156_v57 = vadd.f32 %v728_v35, %v155_v56  ;;  %v203_v60 = vmax.f32 %v153_v53, 0.0 }
  0xec   :  { %v206_v59 = vmax.f32 %v164_v55, 0.0 }
  0xed   :  { %v204_v61 = vmax.f32 %v156_v57, 0.0 }
  0xee   :  { %v218_v62 = vpack.c.bf16 %v206_v59, %v205_v58 }
  0xef   :  { %v217_v63 = vpack.c.bf16 %v204_v61, %v203_v60  ;;  %v789_v0 = vpop.f32.mrb[8].mxu0 }
  0xf0   :  { %v177_v1 = vadd.f32 %v789_v0, %v728_v35  ;;  %v168_v2 = vpop.f32.mrb[9].mxu0 }
  0xf1   :  { %815 = vmatprep.mubr.bf16.mxu1 %v217_v63  ;;  %v169_v3 = vadd.f32 %v728_v35, %v168_v2  ;;  %v790_v4 = vpop.f32.mrb[10].mxu0 }
  0xf2   :  { %816 = vmatmul.mubr.bf16.vlgmr.msra.gmra.mrb[0].mxu1 %v218_v62  ;;  %v209_v5 = vmax.f32 %v177_v1, 0.0  ;;  %v180_v6 = vadd.f32 %v790_v4, %v728_v35  ;;  %v171_v7 = vpop.f32.mrb[11].mxu0 }
  0xf3   :  { %v207_v8 = vmax.f32 %v169_v3, 0.0  ;;  %v172_v9 = vadd.f32 %v728_v35, %v171_v7 }
  0xf4   :  { %v210_v10 = vmax.f32 %v180_v6, 0.0 }
  0xf5   :  { %v208_v11 = vmax.f32 %v172_v9, 0.0 }
  0xf6   :  { %v220_v12 = vpack.c.bf16 %v210_v10, %v209_v5 }
  0xf7   :  { %v219_v13 = vpack.c.bf16 %v208_v11, %v207_v8  ;;  %v793_v14 = vpop.f32.mrb[12].mxu0 }
  0xf8   :  { %v193_v15 = vadd.f32 %v793_v14, %v728_v35  ;;  %v184_v16 = vpop.f32.mrb[13].mxu0 }
  0xf9   :  { %819 = vmatprep.mubr.bf16.mxu1 %v219_v13  ;;  %v185_v17 = vadd.f32 %v728_v35, %v184_v16  ;;  %v794_v18 = vpop.f32.mrb[14].mxu0 }
  0xfa   :  { %820 = vmatmul.mubr.bf16.gmra.mrb[4].mxu1 %v220_v12  ;;  %v213_v19 = vmax.f32 %v193_v15, 0.0  ;;  %v196_v20 = vadd.f32 %v794_v18, %v728_v35  ;;  %v187_v21 = vpop.f32.mrb[15].mxu0 }
  0xfb   :  { %v211_v22 = vmax.f32 %v185_v17, 0.0  ;;  %v188_v23 = vadd.f32 %v728_v35, %v187_v21  ;;  %v1089_v35 = vld [vmem:[%s1211_s5] ss:$0 sm:$0xff]  ;;  %s720_s5 = sshll.u32 %s946_s4, 4  ;;  %s721_s5 = int_to_ptr.vmem [resolvable:$true] %s720_s5 }
  0xfc   :  { %v214_v24 = vmax.f32 %v196_v20, 0.0  ;;  %s921_s8 = scalar_lea.vmem %s721_s5, 16  ;;  %s925_s9 = scalar_lea.vmem %s721_s5, 32 }
  0xfd   :  { %v212_v25 = vmax.f32 %v188_v23, 0.0  ;;  %p922_p0 = scmp.ne.s32.totalorder %s721_s5, %s921_s8  ;;  %p926_p1 = scmp.lt.s32.totalorder %s721_s5, %s721_s5 }
  0xfe   :  { %v222_v26 = vpack.c.bf16 %v214_v24, %v213_v19  ;;  %p927_p2 = scmp.lt.s32.totalorder %s925_s9, %s921_s8 }
  0xff   :  { %v221_v27 = vpack.c.bf16 %v212_v25, %v211_v22 }
 0x100   :  { %p928_p3 = por %p927_p2, %p926_p1 }
 0x101   :  { %823 = vmatprep.mubr.bf16.mxu1 %v221_v27 }
 0x102   :  { %824 = vmatmul.mubr.bf16.gmra.mrb[8].mxu1 %v222_v26  ;;  %p929_p4 = pnand %p928_p3, %p922_p0 }
 0x1bd   :  { %v813_v30 = vpop.f32.mrb[16].mxu0 }
 0x1be   :  { %v337_v31 = vadd.f32 %v813_v30, %v1082_v29  ;;  %v328_v32 = vpop.f32.mrb[17].mxu0 }
 0x1bf   :  { %v329_v33 = vadd.f32 %v1082_v29, %v328_v32  ;;  %v814_v34 = vpop.f32.mrb[18].mxu0 }
 0x1c0   :  { %v393_v36 = vmax.f32 %v337_v31, 0.0  ;;  %v340_v37 = vadd.f32 %v814_v34, %v1082_v29  ;;  %v331_v38 = vpop.f32.mrb[19].mxu0  ;;  %v479_v34 = vld [vmem:[#allocation2] sm:$0x1] }
 0x1c1   :  { %v391_v39 = vmax.f32 %v329_v33, 0.0  ;;  %v332_v40 = vadd.f32 %v1082_v29, %v331_v38 }
 0x1c2   :  { %v394_v41 = vmax.f32 %v340_v37, 0.0  ;;  %v416_v42 = vmul.f32 %v1089_v35, %v393_v36 }
 0x1c3   :  { %v392_v43 = vmax.f32 %v332_v40, 0.0  ;;  %v414_v44 = vmul.f32 %v1089_v35, %v391_v39 }
 0x1c4   :  { %v437_v45 = vsel %vm430_vm1, %v416_v42, 0.0  ;;  %v417_v46 = vmul.f32 %v1089_v35, %v394_v41 }
 0x1c5   :  { %v817_v47 = vpop.f32.mrb[0].mxu1  ;;  %438 = vadd.xlane.f32.xlu1 %v437_v45  ;;  %v431_v48 = vsel %vm430_vm1, %v414_v44, 0.0  ;;  %v415_v49 = vmul.f32 %v1089_v35, %v392_v43 }
 0x1c6   :  { %v353_v50 = vadd.f32 %v817_v47, %v1082_v29  ;;  %v344_v51 = vpop.f32.mrb[1].mxu1  ;;  %432 = vadd.xlane.f32.xlu0 %v431_v48  ;;  %v440_v56 = vsel %vm430_vm1, %v417_v46, 0.0 }
 0x1c7   :  { %v345_v52 = vadd.f32 %v1082_v29, %v344_v51  ;;  %v818_v53 = vpop.f32.mrb[2].mxu1  ;;  %v434_v60 = vsel %vm430_vm1, %v415_v49, 0.0 }
 0x1c8   :  { %v397_v54 = vmax.f32 %v353_v50, 0.0  ;;  %v347_v55 = vpop.f32.mrb[3].mxu1  ;;  %v356_v58 = vadd.f32 %v818_v53, %v1082_v29  ;;  %v485_v53 = vlaneseq }
 0x1c9   :  { %v395_v57 = vmax.f32 %v345_v52, 0.0  ;;  %v348_v59 = vadd.f32 %v1082_v29, %v347_v55  ;;  %441 = vadd.xlane.f32.xlu1 %v440_v56 }
 0x1ca   :  { %435 = vadd.xlane.f32.xlu0 %v434_v60  ;;  %v420_v61 = vmul.f32 %v1089_v35, %v397_v54  ;;  %v398_v0 = vmax.f32 %v356_v58, 0.0  ;;  %v1138_v56 = vshrl.u32 %v485_v53, 7 }
 0x1cb   :  { %v396_v62 = vmax.f32 %v348_v59, 0.0  ;;  %v418_v3 = vmul.f32 %v1089_v35, %v395_v57 }
 0x1cc   :  { %v449_v63 = vsel %vm430_vm1, %v420_v61, 0.0  ;;  %v421_v13 = vmul.f32 %v1089_v35, %v398_v0  ;;  %v487_v58 = vsub.s32 0, %v1138_v56 }
 0x1cd   :  { %v419_v1 = vmul.f32 %v1089_v35, %v396_v62  ;;  %v821_v2 = vpop.f32.mrb[4].mxu1  ;;  %v443_v12 = vsel %vm430_vm1, %v418_v3, 0.0 }
 0x1ce   :  { %450 = vadd.xlane.f32.xlu0 %v449_v63  ;;  %v369_v4 = vadd.f32 %v821_v2, %v1082_v29  ;;  %v360_v5 = vpop.f32.mrb[5].mxu1  ;;  %v452_v19 = vsel %vm430_vm1, %v421_v13, 0.0 }
 0x1cf   :  { %v446_v6 = vsel %vm430_vm1, %v419_v1, 0.0  ;;  %v361_v7 = vadd.f32 %v1082_v29, %v360_v5  ;;  %v822_v8 = vpop.f32.mrb[6].mxu1 }
 0x1d0   :  { %447 = vadd.xlane.f32.xlu1 %v446_v6  ;;  %v401_v9 = vmax.f32 %v369_v4, 0.0  ;;  %v372_v10 = vadd.f32 %v822_v8, %v1082_v29  ;;  %v363_v11 = vpop.f32.mrb[7].mxu1 }
 0x1d1   :  { %v399_v15 = vmax.f32 %v361_v7, 0.0  ;;  %v364_v16 = vadd.f32 %v1082_v29, %v363_v11 }
 0x1d2   :  { %444 = vadd.xlane.f32.xlu0 %v443_v12  ;;  %v402_v14 = vmax.f32 %v372_v10, 0.0  ;;  %v424_v17 = vmul.f32 %v1089_v35, %v401_v9 }
 0x1d3   :  { %v400_v23 = vmax.f32 %v364_v16, 0.0  ;;  %v422_v26 = vmul.f32 %v1089_v35, %v399_v15 }
 0x1d4   :  { %v425_v18 = vmul.f32 %v1089_v35, %v402_v14  ;;  %v461_v24 = vsel %vm430_vm1, %v424_v17, 0.0 }
 0x1d5   :  { %v825_v20 = vpop.f32.mrb[8].mxu1  ;;  %v455_v31 = vsel %vm430_vm1, %v422_v26, 0.0  ;;  %v423_v33 = vmul.f32 %v1089_v35, %v400_v23 }
 0x1d6   :  { %453 = vadd.xlane.f32.xlu0 %v452_v19  ;;  %v376_v21 = vpop.f32.mrb[9].mxu1  ;;  %v464_v22 = vsel %vm430_vm1, %v425_v18, 0.0  ;;  %v385_v25 = vadd.f32 %v825_v20, %v1082_v29 }
 0x1d7   :  { %v826_v27 = vpop.f32.mrb[10].mxu1  ;;  %v377_v32 = vadd.f32 %v1082_v29, %v376_v21  ;;  %v458_v37 = vsel %vm430_vm1, %v423_v33, 0.0 }
 0x1d8   :  { %v379_v28 = vpop.f32.mrb[11].mxu1  ;;  %v405_v30 = vmax.f32 %v385_v25, 0.0  ;;  %v388_v40 = vadd.f32 %v826_v27, %v1082_v29 }
 0x1d9   :  { %v403_v36 = vmax.f32 %v377_v32, 0.0  ;;  %v380_v38 = vadd.f32 %v1082_v29, %v379_v28 }
 0x1da   :  { %462 = vadd.xlane.f32.xlu0 %v461_v24  ;;  %v428_v39 = vmul.f32 %v1089_v35, %v405_v30  ;;  %v406_v44 = vmax.f32 %v388_v40, 0.0 }
 0x1db   :  { %v404_v41 = vmax.f32 %v380_v38, 0.0  ;;  %v426_v43 = vmul.f32 %v1089_v35, %v403_v36 }
 0x1dc   :  { %v473_v42 = vsel %vm430_vm1, %v428_v39, 0.0  ;;  %v429_v48 = vmul.f32 %v1089_v35, %v406_v44 }
 0x1dd   :  { %v467_v45 = vsel %vm430_vm1, %v426_v43, 0.0  ;;  %v427_v46 = vmul.f32 %v1089_v35, %v404_v41 }
 0x1de   :  { %456 = vadd.xlane.f32.xlu0 %v455_v31  ;;  %v476_v49 = vsel %vm430_vm1, %v429_v48, 0.0 }
 0x1df   :  { %v470_v47 = vsel %vm430_vm1, %v427_v46, 0.0 }
 0x1e1   :  { %482 = vperm.xlu1 %845, %v479_v34  }
 0x1e2   :  { %459 = vadd.xlane.f32.xlu0 %v458_v37 }
 0x1e6   :  { %474 = vadd.xlane.f32.xlu0 %v473_v42 }
 0x1ea   :  { %468 = vadd.xlane.f32.xlu0 %v467_v45  ;;  %v1157_v45 = vand.u32 127, %v485_v53 }
 0x1ee   :  { %471 = vadd.xlane.f32.xlu0 %v470_v47 }
 0x1f2   :  { %477 = vadd.xlane.f32.xlu0 %v476_v49 }
 0x205   :  { %465 = vadd.xlane.f32.xlu1 %v464_v22 }
 0x252   :  { %v439_v29 = vpop.xlane.xlu1 %438 }
 0x253   :  { %v433_v50 = vpop.xlane.xlu0 %432 }
 0x256   :  { %v442_v52 = vpop.xlane.xlu1 %441 }
 0x257   :  { %v436_v51 = vpop.xlane.xlu0 %435 }
 0x25b   :  { %v451_v54 = vpop.xlane.xlu0 %450 }
 0x25d   :  { %v448_v55 = vpop.xlane.xlu1 %447 }
 0x25f   :  { %v445_v57 = vpop.xlane.xlu0 %444 }
 0x261   :  { %v483_v59 = vpop.permute.xlu1 %482 }
 0x262   :  { %v1141_v60 = vrot.slane %v483_v59, %v487_v58 }
 0x263   :  { %v454_v35 = vpop.xlane.xlu0 %453 }
 0x264   :  { %v489_v62 = vadd.f32 %v1141_v60, %v433_v50  ;;  %v490_v0 = vadd.f32 %v1141_v60, %v436_v51  ;;  %v491_v1 = vadd.f32 %v1141_v60, %v439_v29  ;;  %v492_v7 = vadd.f32 %v1141_v60, %v442_v52 }
 0x265   :  { %v493_v10 = vadd.f32 %v1141_v60, %v445_v57  ;;  %v494_v13 = vadd.f32 %v1141_v60, %v448_v55  ;;  %v495_v14 = vadd.f32 %v1141_v60, %v451_v54  ;;  %v496_v19 = vadd.f32 %v1141_v60, %v454_v35 }
 0x266   :  { %v505_v2 = vsub.f32 0.0, %v489_v62  ;;  %v506_v3 = vsub.f32 0.0, %v490_v0  ;;  %v507_v5 = vsub.f32 0.0, %v491_v1  ;;  %v508_v12 = vsub.f32 0.0, %v492_v7 }
 0x267   :  { %v463_v61 = vpop.xlane.xlu0 %462  ;;  %v509_v15 = vsub.f32 0.0, %v493_v10  ;;  %v510_v18 = vsub.f32 0.0, %v494_v13  ;;  %v511_v20 = vsub.f32 0.0, %v495_v14  ;;  %v512_v27 = vsub.f32 0.0, %v496_v19 }
 0x268   :  { %v521_v6 = vmul.f32 1.442695, %v505_v2  ;;  %v523_v8 = vmul.f32 1.442695, %v506_v3  ;;  %v525_v11 = vmul.f32 1.442695, %v507_v5  ;;  %v499_v36 = vadd.f32 %v1141_v60, %v463_v61 }
 0x269   :  { %v527_v16 = vmul.f32 1.442695, %v508_v12  ;;  %v529_v21 = vmul.f32 1.442695, %v509_v15  ;;  %v531_v26 = vmul.f32 1.442695, %v510_v18  ;;  %v605_v2 = vsub.s32 %v1157_v45, %v1138_v56 }
 0x26a   :  { %857 = vpow2.f32 %v521_v6  ;;  %v533_v30 = vmul.f32 1.442695, %v511_v20  ;;  %v535_v38 = vmul.f32 1.442695, %v512_v27  ;;  %v515_v46 = vsub.f32 0.0, %v499_v36 }
 0x26b   :  { %v457_v63 = vpop.xlane.xlu0 %456  ;;  %859 = vpow2.f32 %v523_v8  ;;  %v607_v57 = vadd.s32 4294967288, %v1157_v45  ;;  %v621_v12 = vadd.s32 4294967272, %v1157_v45 }
 0x26c   :  { %861 = vpow2.f32 %v525_v11  ;;  %v497_v23 = vadd.f32 %v1141_v60, %v457_v63  ;;  %v541_v54 = vmul.f32 1.442695, %v515_v46  ;;  %v614_v63 = vadd.s32 4294967280, %v1157_v45 }
 0x26d   :  { %863 = vpow2.f32 %v527_v16  ;;  %v610_v3 = vsub.s32 %v607_v57, %v1138_v56 }
 0x26e   :  { %865 = vpow2.f32 %v529_v21  ;;  %v513_v33 = vsub.f32 0.0, %v497_v23  ;;  %v617_v11 = vsub.s32 %v614_v63, %v1138_v56 }
 0x26f   :  { %v460_v4 = vpop.xlane.xlu0 %459  ;;  %867 = vpow2.f32 %v531_v26 }
 0x270   :  { %v498_v25 = vadd.f32 %v1141_v60, %v460_v4  ;;  %869 = vpow2.f32 %v533_v30  ;;  %v537_v41 = vmul.f32 1.442695, %v513_v33 }
 0x272   :  { %v514_v37 = vsub.f32 0.0, %v498_v25 }
 0x273   :  { %v475_v9 = vpop.xlane.xlu0 %474 }
 0x274   :  { %v858_v22 = vpop.eup %857  ;;  %v539_v47 = vmul.f32 1.442695, %v514_v37  ;;  %v503_v48 = vadd.f32 %v1141_v60, %v475_v9  ;;  %v642_v37 = vadd.s32 4294967248, %v1157_v45 }
 0x275   :  { %v860_v24 = vpop.eup %859  ;;  %v553_v31 = vadd.f32 1.0, %v858_v22  ;;  %v624_v22 = vsub.s32 %v621_v12, %v1138_v56 }
 0x276   :  { %v862_v32 = vpop.eup %861  ;;  %v554_v34 = vadd.f32 1.0, %v860_v24  ;;  %v519_v55 = vsub.f32 0.0, %v503_v48 }
 0x277   :  { %v469_v17 = vpop.xlane.xlu0 %468  ;;  %v555_v40 = vadd.f32 1.0, %v862_v32  ;;  %871 = vrcp.f32 %v553_v31  ;;  %v864_v44 = vpop.eup %863 }
 0x278   :  { %v501_v39 = vadd.f32 %v1141_v60, %v469_v17  ;;  %873 = vrcp.f32 %v554_v34  ;;  %v866_v50 = vpop.eup %865  ;;  %v556_v52 = vadd.f32 1.0, %v864_v44  ;;  %v549_v1 = vmul.f32 1.442695, %v519_v55 }
 0x279   :  { %875 = vpow2.f32 %v535_v38  ;;  %v868_v58 = vpop.eup %867  ;;  %v557_v35 = vadd.f32 1.0, %v866_v50 }
 0x27a   :  { %v517_v49 = vsub.f32 0.0, %v501_v39  ;;  %877 = vrcp.f32 %v555_v40  ;;  %v870_v61 = vpop.eup %869  ;;  %v558_v6 = vadd.f32 1.0, %v868_v58 }
 0x27b   :  { %v472_v28 = vpop.xlane.xlu0 %471  ;;  %879 = vpow2.f32 %v537_v41  ;;  %v559_v10 = vadd.f32 1.0, %v870_v61 }
 0x27c   :  { %v502_v42 = vadd.f32 %v1141_v60, %v472_v28  ;;  %881 = vpow2.f32 %v539_v47  ;;  %v545_v53 = vmul.f32 1.442695, %v517_v49  ;;  %v635_v28 = vadd.s32 4294967256, %v1157_v45 }
 0x27d   :  { %883 = vrcp.f32 %v556_v52  ;;  %v649_v47 = vadd.s32 4294967240, %v1157_v45 }
 0x27e   :  { %v518_v51 = vsub.f32 0.0, %v502_v42  ;;  %885 = vpow2.f32 %v541_v54  ;;  %v638_v41 = vsub.s32 %v635_v28, %v1138_v56  ;;  %v663_v54 = vadd.s32 4294967224, %v1157_v45 }
 0x27f   :  { %v478_v43 = vpop.xlane.xlu0 %477  ;;  %887 = vpow2.f32 %v545_v53 }
 0x280   :  { %v504_v29 = vadd.f32 %v1141_v60, %v478_v43  ;;  %v547_v62 = vmul.f32 1.442695, %v518_v51  ;;  %889 = vrcp.f32 %v557_v35  ;;  %v645_v51 = vsub.s32 %v642_v37, %v1138_v56 }
 0x281   :  { %v872_v0 = vpop.eup %871 }
 0x282   :  { %v520_v59 = vsub.f32 0.0, %v504_v29  ;;  %v874_v4 = vpop.eup %873  ;;  %891 = vpow2.f32 %v547_v62  ;;  %v606_v15 = vrot.slane %v872_v0, %v605_v2  ;;  %v656_v29 = vadd.s32 4294967232, %v1157_v45 }
 0x283   :  { %v876_v9 = vpop.eup %875  ;;  %893 = vpow2.f32 %v549_v1  ;;  %v611_v16 = vrot.slane %v874_v4, %v610_v3  ;;  %v666_v1 = vsub.s32 %v663_v54, %v1138_v56  ;;  %v670_v3 = vadd.s32 4294967216, %v1157_v45 }
 0x284   :  { %v551_v7 = vmul.f32 1.442695, %v520_v59  ;;  %v878_v13 = vpop.eup %877  ;;  %895 = vrcp.f32 %v558_v6  ;;  %v560_v20 = vadd.f32 1.0, %v876_v9  ;;  %v652_v59 = vsub.s32 %v649_v47, %v1138_v56 }
 0x285   :  { %v880_v17 = vpop.eup %879  ;;  %v618_v21 = vrot.slane %v878_v13, %v617_v11  ;;  %v613_v24 = vsel %vm612_vm2, %v611_v16, %v606_v15  ;;  %v659_v62 = vsub.s32 %v656_v29, %v1138_v56  ;;  %v677_v6 = vadd.s32 4294967208, %v1157_v45 }
 0x286   :  { %v882_v18 = vpop.eup %881  ;;  %897 = vpow2.f32 %v551_v7  ;;  %v561_v23 = vadd.f32 1.0, %v880_v17  ;;  %v691_v11 = vadd.s32 4294967192, %v1157_v45  ;;  %v673_v12 = vsub.s32 %v670_v3, %v1138_v56 }
 0x287   :  { %899 = vrcp.f32 %v559_v10  ;;  %v884_v25 = vpop.eup %883  ;;  %v562_v26 = vadd.f32 1.0, %v882_v18  ;;  %v620_v31 = vsel %vm619_vm3, %v618_v21, %v613_v24  ;;  %v698_v13 = vadd.s32 4294967184, %v1157_v45 }
 0x288   :  { %v886_v27 = vpop.eup %885  ;;  %v625_v34 = vrot.slane %v884_v25, %v624_v22  ;;  %v680_v15 = vsub.s32 %v677_v6, %v1138_v56  ;;  %v705_v16 = vadd.s32 4294967176, %v1157_v45  ;;  %v694_v21 = vsub.s32 %v691_v11, %v1138_v56 }
 0x289   :  { %v888_v30 = vpop.eup %887  ;;  %v563_v39 = vadd.f32 1.0, %v886_v27  ;;  %v701_v24 = vsub.s32 %v698_v13, %v1138_v56 }
 0x28a   :  { %v890_v33 = vpop.eup %889  ;;  %v627_v40 = vsel %vm626_vm4, %v625_v34, %v620_v31  ;;  %v565_v43 = vadd.f32 1.0, %v888_v30  ;;  %v708_v27 = vsub.s32 %v705_v16, %v1138_v56 }
 0x28c   :  { %v892_v36 = vpop.eup %891 }
 0x28d   :  { %v894_v38 = vpop.eup %893  ;;  %v566_v48 = vadd.f32 1.0, %v892_v36 }
 0x28e   :  { %v896_v42 = vpop.eup %895  ;;  %v567_v55 = vadd.f32 1.0, %v894_v38 }
 0x28f   :  { %v639_v57 = vrot.slane %v896_v42, %v638_v41 }
 0x290   :  { %v898_v46 = vpop.eup %897 }
 0x291   :  { %v900_v49 = vpop.eup %899  ;;  %v568_v53 = vadd.f32 1.0, %v898_v46 }
 0x292   :  { %v466_v5 = vpop.xlane.xlu1 %465  ;;  %v646_v63 = vrot.slane %v900_v49, %v645_v51 }
 0x293   :  { %v500_v8 = vadd.f32 %v1141_v60, %v466_v5  ;;  %v628_v60 = vadd.s32 4294967264, %v1157_v45 }
 0x295   :  { %v516_v14 = vsub.f32 0.0, %v500_v8  ;;  %v631_v32 = vsub.s32 %v628_v60, %v1138_v56  ;;  %v684_v8 = vadd.s32 4294967200, %v1157_v45 }
 0x297   :  { %v543_v19 = vmul.f32 1.442695, %v516_v14  ;;  %v632_v44 = vrot.slane %v890_v33, %v631_v32 }
 0x299   :  { %901 = vpow2.f32 %v543_v19  ;;  %v634_v50 = vsel %vm633_vm5, %v632_v44, %v627_v40  ;;  %v687_v19 = vsub.s32 %v684_v8, %v1138_v56 }
 0x29a   :  { %903 = vrcp.f32 %v560_v20  ;;  %v641_v35 = vsel %vm640_vm6, %v639_v57, %v634_v50 }
 0x29b   :  { %905 = vrcp.f32 %v561_v23  ;;  %v648_v4 = vsel %vm647_vm7, %v646_v63, %v641_v35 }
 0x29c   :  { %907 = vrcp.f32 %v562_v26 }
 0x29d   :  { %909 = vrcp.f32 %v563_v39 }
 0x29e   :  { %911 = vrcp.f32 %v565_v43 }
 0x29f   :  { %913 = vrcp.f32 %v566_v48 }
 0x2a3   :  { %v902_v52 = vpop.eup %901 }
 0x2a4   :  { %v564_v58 = vadd.f32 1.0, %v902_v52  ;;  %v904_v61 = vpop.eup %903 }
 0x2a5   :  { %v906_v0 = vpop.eup %905  ;;  %v653_v5 = vrot.slane %v904_v61, %v652_v59 }
 0x2a6   :  { %915 = vrcp.f32 %v564_v58  ;;  %v908_v2 = vpop.eup %907  ;;  %v660_v7 = vrot.slane %v906_v0, %v659_v62 }
 0x2a7   :  { %917 = vrcp.f32 %v567_v55  ;;  %v667_v9 = vrot.slane %v908_v2, %v666_v1  ;;  %v655_v10 = vsel %vm654_vm8, %v653_v5, %v648_v4  ;;  %v910_v14 = vpop.eup %909 }
 0x2a8   :  { %919 = vrcp.f32 %v568_v53  ;;  %v912_v17 = vpop.eup %911  ;;  %v662_v18 = vsel %vm661_vm9, %v660_v7, %v655_v10  ;;  %v674_v23 = vrot.slane %v910_v14, %v673_v12 }
 0x2a9   :  { %v914_v60 = vpop.eup %913  ;;  %v669_v20 = vsel %vm668_vm10, %v667_v9, %v662_v18  ;;  %v688_v30 = vrot.slane %v912_v17, %v687_v19 }
 0x2aa   :  { %v676_v28 = vsel %vm675_vm11, %v674_v23, %v669_v20  ;;  %v695_v32 = vrot.slane %v914_v60, %v694_v21 }
 0x2b0   :  { %v916_v22 = vpop.eup %915 }
 0x2b1   :  { %v918_v25 = vpop.eup %917  ;;  %v681_v26 = vrot.slane %v916_v22, %v680_v15 }
 0x2b2   :  { %v920_v45 = vpop.eup %919  ;;  %v702_v34 = vrot.slane %v918_v25, %v701_v24 }
 0x2b3   :  { %v683_v31 = vsel %vm682_vm12, %v681_v26, %v676_v28  ;;  %v709_v37 = vrot.slane %v920_v45, %v708_v27 }
 0x2b4   :  { %v690_v33 = vsel %vm689_vm13, %v688_v30, %v683_v31 }
 0x2b5   :  { %v697_v36 = vsel %vm696_vm14, %v695_v32, %v690_v33 }
 0x2b6   :  { %v704_v38 = vsel %vm703_vm15, %v702_v34, %v697_v36 }
 0x2b7   :  { %v711_v39 = vsel %vm710_vm0, %v709_v37, %v704_v38 }
 0x2b8   :  { %713 = vst [vmem:[#allocation3] sm:$0x1] %v711_v39 }
 0x2b9   :  { %932 = shalt.err (!%p929_p4)
}
 0x2ba   :  { %s933_s11 = scalar_lea.hbm %s1213_s7, 16 }
 0x2bb   :  { %p934_p5 = scmp.ne.s32.totalorder %s1213_s7, %s933_s11  ;;  %p937_p6 = scmp.lt.u32.totalorder %s933_s11, %s1213_s7 }
 0x2bd   :  { %p939_p7 = pnand %p937_p6, %p934_p5 }
 0x2bf   :  { %942 = shalt.err (!%p939_p7)
}
 0x2c0   :  { %723 = dma.vmem_to_hbm [thread:$0]  %s721_s5, 16, %s1213_s7, [#allocation4]  }
 0x2c1   :  { %943 = dma.done.wait [#allocation4], 16  }
 0x2c2   :  { %944 = vsyncadd [#allocation4], 4294967280 }
 0x2c3   :  { %727 = vsyncpa [#allocation4], 1 }

</bundles_post_ra>
